<compile_context>
chip_gen: v6e
topology: v6e:2x2x1
jax: 0.10.0
libtpu: 0.0.40
codegen_flags: <defaults>
</compile_context>

<pallas_src>
import functools
import math

import jax
import jax.numpy as jnp
from jax.experimental import pallas as pl
from jax.experimental.pallas import tpu as pltpu


# ---------------------------------------------------------------------------
# Pallas kernel: one grid step == `block_b` batch elements
# ---------------------------------------------------------------------------
def _mha_kernel(q_ref, k_ref, v_ref,
                wq_ref, wk_ref, wv_ref,
                wo_ref, bo_ref,
                ln1w_ref, ln1b_ref,
                ln2w_ref, ln2b_ref,
                out_ref,
                attn_scr,
                *, num_heads, dim_out):
    f32 = jnp.float32
    cdt = wq_ref.dtype                       # MXU compute dtype (bf16)
    Bt, Nq, dim_q = q_ref.shape
    _, Nk, dim_k = k_ref.shape
    dim_v = v_ref.shape[2]
    dh = dim_out // num_heads
    # NOTE: the PyTorch module scales by 1/sqrt(dim_out), NOT 1/sqrt(head_dim).
    scale = 1.0 / math.sqrt(dim_out)
    eps = 1e-5

    # --- input projections (no bias): one big MXU matmul each over Bt*N rows ---
    q2 = q_ref[...].reshape(Bt * Nq, dim_q)
    k2 = k_ref[...].reshape(Bt * Nk, dim_k)
    v2 = v_ref[...].reshape(Bt * Nk, dim_v)
    qp = jnp.dot(q2, wq_ref[...], preferred_element_type=f32)    # (Bt*Nq, dim_out) f32
    kp = jnp.dot(k2, wk_ref[...], preferred_element_type=f32)    # (Bt*Nk, dim_out) f32
    vp = jnp.dot(v2, wv_ref[...], preferred_element_type=f32)

    qp3 = qp.reshape(Bt, Nq, dim_out)                             # f32 (kept for residual)
    kp3 = kp.reshape(Bt, Nk, dim_out).astype(cdt)                 # bf16 for attention dots
    vp3 = vp.reshape(Bt, Nk, dim_out).astype(cdt)

    # --- multi-head attention; write residual+context per head into scratch ---
    # TODO(synk): optional `mask` argument of the PyTorch module is not
    # implemented (forward is exercised with mask=None).
    for h in range(num_heads):                                    # static unroll
        sl = slice(h * dh, (h + 1) * dh)
        qh = qp3[:, :, sl]                                        # (Bt, Nq, dh) f32
        kh = kp3[:, :, sl]                                        # (Bt, Nk, dh) bf16
        vh = vp3[:, :, sl]
        logits = jnp.einsum('bqd,bkd->bqk', qh.astype(cdt), kh,
                            preferred_element_type=f32) * scale   # (Bt, Nq, Nk) f32
        m = jnp.max(logits, axis=-1, keepdims=True)
        e = jnp.exp(logits - m)
        p = e * pl.reciprocal(jnp.sum(e, axis=-1, keepdims=True), approx=True)
        ctx = jnp.einsum('bqk,bkd->bqd', p.astype(cdt), vh,
                         preferred_element_type=f32)              # (Bt, Nq, dh) f32
        attn_scr[:, :, sl] = qh + ctx                             # fused residual q + attn

    # --- LayerNorm 1 (single-pass moments) ---
    x = attn_scr[...].reshape(Bt * Nq, dim_out)
    mu = jnp.mean(x, axis=-1, keepdims=True)
    var = jnp.maximum(jnp.mean(x * x, axis=-1, keepdims=True) - mu * mu, 0.0)
    x = (x - mu) * jax.lax.rsqrt(var + eps)
    x = x * ln1w_ref[...] + ln1b_ref[...]                         # (1, dim_out) broadcasts

    # --- fc_out + ReLU, residual + LayerNorm 2 ---
    y = jnp.dot(x.astype(cdt), wo_ref[...], preferred_element_type=f32) + bo_ref[...]
    z = x + jnp.maximum(y, 0.0)
    mu2 = jnp.mean(z, axis=-1, keepdims=True)
    var2 = jnp.maximum(jnp.mean(z * z, axis=-1, keepdims=True) - mu2 * mu2, 0.0)
    z = (z - mu2) * jax.lax.rsqrt(var2 + eps)
    z = z * ln2w_ref[...] + ln2b_ref[...]

    out_ref[...] = z.reshape(Bt, Nq, dim_out).astype(out_ref.dtype)


# ---------------------------------------------------------------------------
# Wrapper
# ---------------------------------------------------------------------------
def _pick_block_b(batch):
    """Largest divisor of `batch` <= 8 that still leaves >= 2 grid steps."""
    best = 1
    for cand in range(1, min(batch, 8) + 1):
        if batch % cand != 0:
            continue
        if batch // cand >= 2 or batch == 1:
            best = cand
    return best


def multi_head_attn(q, k, v, params, *, num_heads=8, block_b=None,
                    compute_dtype=jnp.bfloat16):
    """q: (B, Nq, dim_q), k: (B, Nk, dim_k), v: (B, Nk, dim_v)."""
    B, Nq, dim_q = q.shape
    _, Nk, dim_k = k.shape
    dim_v = v.shape[2]
    dim_out = params["wq"].shape[1]
    assert dim_out % num_heads == 0

    if block_b is None:
        block_b = _pick_block_b(B)
    assert B % block_b == 0
    grid_b = B // block_b

    cdt = compute_dtype
    # bf16 operands for the MXU; f32 for biases / LayerNorm affine params.
    qc, kc, vc = q.astype(cdt), k.astype(cdt), v.astype(cdt)
    wq, wk, wv, wo = (params[n].astype(cdt) for n in ("wq", "wk", "wv", "wo"))
    f32 = jnp.float32
    bo = params["bo"].astype(f32)
    ln1w, ln1b = params["ln1_w"].astype(f32), params["ln1_b"].astype(f32)
    ln2w, ln2b = params["ln2_w"].astype(f32), params["ln2_b"].astype(f32)

    kernel = functools.partial(_mha_kernel, num_heads=num_heads, dim_out=dim_out)
    full2d = lambda shape: pl.BlockSpec(shape, lambda b: (0, 0))   # resident weights

    return pl.pallas_call(
        kernel,
        out_shape=jax.ShapeDtypeStruct((B, Nq, dim_out), jnp.float32),
        grid_spec=pltpu.PrefetchScalarGridSpec(
            num_scalar_prefetch=0,
            grid=(grid_b,),
            in_specs=[
                pl.BlockSpec((block_b, Nq, dim_q), lambda b: (b, 0, 0)),
                pl.BlockSpec((block_b, Nk, dim_k), lambda b: (b, 0, 0)),
                pl.BlockSpec((block_b, Nk, dim_v), lambda b: (b, 0, 0)),
                full2d((dim_q, dim_out)),    # wq (pre-transposed: in x out)
                full2d((dim_k, dim_out)),    # wk
                full2d((dim_v, dim_out)),    # wv
                full2d((dim_out, dim_out)),  # wo
                full2d((1, dim_out)),        # bo
                full2d((1, dim_out)),        # ln1 weight
                full2d((1, dim_out)),        # ln1 bias
                full2d((1, dim_out)),        # ln2 weight
                full2d((1, dim_out)),        # ln2 bias
            ],
            out_specs=pl.BlockSpec((block_b, Nq, dim_out), lambda b: (b, 0, 0)),
            scratch_shapes=[pltpu.VMEM((block_b, Nq, dim_out), jnp.float32)],
        ),
        compiler_params=pltpu.CompilerParams(
            dimension_semantics=("parallel",)),
    )(qc, kc, vc, wq, wk, wv, wo, bo, ln1w, ln1b, ln2w, ln2b)


# ---------------------------------------------------------------------------
# Pure-JAX reference (mirrors the PyTorch forward; optional bf16 MXU operands)
# ---------------------------------------------------------------------------
def reference(q, k, v, params, *, num_heads=8, compute_dtype=jnp.float32):
    cdt = compute_dtype
    f32 = jnp.float32
    dim_out = params["wq"].shape[1]
    dh = dim_out // num_heads

    def proj(x, w):
        return jnp.einsum('bnd,de->bne', x.astype(cdt), w.astype(cdt),
                          preferred_element_type=f32)

    qp = proj(q, params["wq"])
    kp = proj(k, params["wk"])
    vp = proj(v, params["wv"])

    heads = []
    for h in range(num_heads):
        sl = slice(h * dh, (h + 1) * dh)
        qh, kh, vh = qp[..., sl], kp[..., sl], vp[..., sl]
        logits = jnp.einsum('bqd,bkd->bqk', qh.astype(cdt), kh.astype(cdt),
                            preferred_element_type=f32) / math.sqrt(dim_out)
        a = jax.nn.softmax(logits, axis=-1)
        heads.append(jnp.einsum('bqk,bkd->bqd', a.astype(cdt), vh.astype(cdt),
                                preferred_element_type=f32))
    attn = jnp.concatenate(heads, axis=-1)

    def ln(x, w, b):
        mu = jnp.mean(x, -1, keepdims=True)
        var = jnp.mean((x - mu) ** 2, -1, keepdims=True)
        return (x - mu) / jnp.sqrt(var + 1e-5) * w + b

    x = ln(qp + attn, params["ln1_w"][0], params["ln1_b"][0])
    y = jnp.einsum('bnd,de->bne', x.astype(cdt), params["wo"].astype(cdt),
                   preferred_element_type=f32) + params["bo"][0]
    y = jax.nn.relu(y)
    return ln(x + y, params["ln2_w"][0], params["ln2_b"][0])


# ---------------------------------------------------------------------------
if __name__ == "__main__":
    # Small shapes consistent with CANP's usage of MultiHeadAttn
    # (dim_hid = 128, num_heads = 8); Nq = target points, Nk = context points.
    B, Nq, Nk = 4, 8, 16
    dim_q = dim_k = dim_v = 128
    dim_out, num_heads = 128, 8

    key = jax.random.PRNGKey(0)
    ks = jax.random.split(key, 12)
    q = jax.random.normal(ks[0], (B, Nq, dim_q), jnp.float32)
    k = jax.random.normal(ks[1], (B, Nk, dim_k), jnp.float32)
    v = jax.random.normal(ks[2], (B, Nk, dim_v), jnp.float32)

    params = {
        "wq": 0.1 * jax.random.normal(ks[3], (dim_q, dim_out), jnp.float32),
        "wk": 0.1 * jax.random.normal(ks[4], (dim_k, dim_out), jnp.float32),
        "wv": 0.1 * jax.random.normal(ks[5], (dim_v, dim_out), jnp.float32),
        "wo": 0.1 * jax.random.normal(ks[6], (dim_out, dim_out), jnp.float32),
        "bo": 0.1 * jax.random.normal(ks[7], (1, dim_out), jnp.float32),
        # perturb LayerNorm affine params slightly so their application is tested
        "ln1_w": 1.0 + 0.05 * jax.random.normal(ks[8], (1, dim_out), jnp.float32),
        "ln1_b": 0.05 * jax.random.normal(ks[9], (1, dim_out), jnp.float32),
        "ln2_w": 1.0 + 0.05 * jax.random.normal(ks[10], (1, dim_out), jnp.float32),
        "ln2_b": 0.05 * jax.random.normal(ks[11], (1, dim_out), jnp.float32),
    }

    out = multi_head_attn(q, k, v, params, num_heads=num_heads)
    out = jax.block_until_ready(out)
    assert out.shape == (B, Nq, dim_out)

    # reference with matching bf16 MXU operands (tight check) ...
    ref_bf16 = reference(q, k, v, params, num_heads=num_heads,
                         compute_dtype=jnp.bfloat16)
    assert jnp.max(jnp.abs(out - ref_bf16)) < 2e-2, "kernel mismatch vs bf16 reference"
    # ... and pure-f32 reference (coarse sanity check of overall semantics)
    ref_f32 = reference(q, k, v, params, num_heads=num_heads,
                        compute_dtype=jnp.float32)
    assert jnp.max(jnp.abs(out - ref_f32)) < 1e-1, "kernel mismatch vs f32 reference"

    print("KERNEL_OK")
</pallas_src>

<mosaic_0001>
module attributes {stable_mosaic.version = 11 : i64} {
  func.func @_mha_kernel(%arg0: i32, %arg1: memref<2x8x128xbf16, #tpu.memory_space<vmem>>, %arg2: memref<2x16x128xbf16, #tpu.memory_space<vmem>>, %arg3: memref<2x16x128xbf16, #tpu.memory_space<vmem>>, %arg4: memref<128x128xbf16, #tpu.memory_space<vmem>>, %arg5: memref<128x128xbf16, #tpu.memory_space<vmem>>, %arg6: memref<128x128xbf16, #tpu.memory_space<vmem>>, %arg7: memref<128x128xbf16, #tpu.memory_space<vmem>>, %arg8: memref<1x128xf32, #tpu.memory_space<vmem>>, %arg9: memref<1x128xf32, #tpu.memory_space<vmem>>, %arg10: memref<1x128xf32, #tpu.memory_space<vmem>>, %arg11: memref<1x128xf32, #tpu.memory_space<vmem>>, %arg12: memref<1x128xf32, #tpu.memory_space<vmem>>, %arg13: memref<2x8x128xf32, #tpu.memory_space<vmem>>, %arg14: memref<2x8x128xf32, #tpu.memory_space<vmem>>) attributes {dimension_semantics = [#tpu.dimension_semantics<parallel>], iteration_bounds = array<i64: 2>, scalar_prefetch = 0 : i64, scratch_operands = 1 : i64, tpu.core_type = #tpu.core_type<tc>, window_params = [{transform_indices = @transform_0, window_bounds = array<i64: 2, 8, 128>}, {transform_indices = @transform_1, window_bounds = array<i64: 2, 16, 128>}, {transform_indices = @transform_2, window_bounds = array<i64: 2, 16, 128>}, {pipeline_mode = #tpu.pipeline_mode<synchronous>, transform_indices = @transform_3, window_bounds = array<i64: 128, 128>}, {pipeline_mode = #tpu.pipeline_mode<synchronous>, transform_indices = @transform_4, window_bounds = array<i64: 128, 128>}, {pipeline_mode = #tpu.pipeline_mode<synchronous>, transform_indices = @transform_5, window_bounds = array<i64: 128, 128>}, {pipeline_mode = #tpu.pipeline_mode<synchronous>, transform_indices = @transform_6, window_bounds = array<i64: 128, 128>}, {pipeline_mode = #tpu.pipeline_mode<synchronous>, transform_indices = @transform_7, window_bounds = array<i64: 1, 128>}, {pipeline_mode = #tpu.pipeline_mode<synchronous>, transform_indices = @transform_8, window_bounds = array<i64: 1, 128>}, {pipeline_mode = #tpu.pipeline_mode<synchronous>, transform_indices = @transform_9, window_bounds = array<i64: 1, 128>}, {pipeline_mode = #tpu.pipeline_mode<synchronous>, transform_indices = @transform_10, window_bounds = array<i64: 1, 128>}, {pipeline_mode = #tpu.pipeline_mode<synchronous>, transform_indices = @transform_11, window_bounds = array<i64: 1, 128>}, {transform_indices = @transform_12, window_bounds = array<i64: 2, 8, 128>}]} {
    %c0 = arith.constant 0 : index
    %c0_0 = arith.constant 0 : index
    %c0_1 = arith.constant 0 : index
    %0 = vector.load %arg1[%c0, %c0_0, %c0_1] : memref<2x8x128xbf16, #tpu.memory_space<vmem>>, vector<2x8x128xbf16>
    %1 = vector.shape_cast %0 : vector<2x8x128xbf16> to vector<16x128xbf16>
    %c0_2 = arith.constant 0 : index
    %c0_3 = arith.constant 0 : index
    %c0_4 = arith.constant 0 : index
    %2 = vector.load %arg2[%c0_2, %c0_3, %c0_4] : memref<2x16x128xbf16, #tpu.memory_space<vmem>>, vector<2x16x128xbf16>
    %3 = vector.shape_cast %2 : vector<2x16x128xbf16> to vector<32x128xbf16>
    %c0_5 = arith.constant 0 : index
    %c0_6 = arith.constant 0 : index
    %c0_7 = arith.constant 0 : index
    %4 = vector.load %arg3[%c0_5, %c0_6, %c0_7] : memref<2x16x128xbf16, #tpu.memory_space<vmem>>, vector<2x16x128xbf16>
    %5 = vector.shape_cast %4 : vector<2x16x128xbf16> to vector<32x128xbf16>
    %c0_8 = arith.constant 0 : index
    %c0_9 = arith.constant 0 : index
    %6 = vector.load %arg4[%c0_8, %c0_9] : memref<128x128xbf16, #tpu.memory_space<vmem>>, vector<128x128xbf16>
    %cst = arith.constant dense<0.000000e+00> : vector<16x128xf32>
    %7 = tpu.matmul %1, %6, %cst {dimension_numbers = #tpu.dot_dimension_numbers<[1], [0], [0], [1], [0, 0, 1, 1], [], []>} : vector<16x128xbf16>, vector<128x128xbf16>, vector<16x128xf32> -> vector<16x128xf32>
    %c0_10 = arith.constant 0 : index
    %c0_11 = arith.constant 0 : index
    %8 = vector.load %arg5[%c0_10, %c0_11] : memref<128x128xbf16, #tpu.memory_space<vmem>>, vector<128x128xbf16>
    %cst_12 = arith.constant dense<0.000000e+00> : vector<32x128xf32>
    %9 = tpu.matmul %3, %8, %cst_12 {dimension_numbers = #tpu.dot_dimension_numbers<[1], [0], [0], [1], [0, 0, 1, 1], [], []>} : vector<32x128xbf16>, vector<128x128xbf16>, vector<32x128xf32> -> vector<32x128xf32>
    %c0_13 = arith.constant 0 : index
    %c0_14 = arith.constant 0 : index
    %10 = vector.load %arg6[%c0_13, %c0_14] : memref<128x128xbf16, #tpu.memory_space<vmem>>, vector<128x128xbf16>
    %cst_15 = arith.constant dense<0.000000e+00> : vector<32x128xf32>
    %11 = tpu.matmul %5, %10, %cst_15 {dimension_numbers = #tpu.dot_dimension_numbers<[1], [0], [0], [1], [0, 0, 1, 1], [], []>} : vector<32x128xbf16>, vector<128x128xbf16>, vector<32x128xf32> -> vector<32x128xf32>
    %12 = vector.shape_cast %7 : vector<16x128xf32> to vector<2x8x128xf32>
    %13 = vector.shape_cast %9 : vector<32x128xf32> to vector<2x16x128xf32>
    %14 = arith.truncf %13 : vector<2x16x128xf32> to vector<2x16x128xbf16>
    %15 = vector.shape_cast %11 : vector<32x128xf32> to vector<2x16x128xf32>
    %16 = arith.truncf %15 : vector<2x16x128xf32> to vector<2x16x128xbf16>
    %17 = vector.extract_strided_slice %12 {offsets = [0, 0, 0], sizes = [2, 8, 16], strides = [1, 1, 1]} : vector<2x8x128xf32> to vector<2x8x16xf32>
    %18 = vector.extract_strided_slice %14 {offsets = [0, 0, 0], sizes = [2, 16, 16], strides = [1, 1, 1]} : vector<2x16x128xbf16> to vector<2x16x16xbf16>
    %19 = vector.extract_strided_slice %16 {offsets = [0, 0, 0], sizes = [2, 16, 16], strides = [1, 1, 1]} : vector<2x16x128xbf16> to vector<2x16x16xbf16>
    %20 = arith.truncf %17 : vector<2x8x16xf32> to vector<2x8x16xbf16>
    "tpu.trace_start"() <{level = 10 : i32, message = "bqd,bkd->bqk"}> : () -> ()
    %cst_16 = arith.constant dense<0.000000e+00> : vector<2x8x16xf32>
    %21 = tpu.matmul %20, %18, %cst_16 {dimension_numbers = #tpu.dot_dimension_numbers<[2], [2], [1], [1], [0, 0, 0, 1, 1, 1], [0], [0]>} : vector<2x8x16xbf16>, vector<2x16x16xbf16>, vector<2x8x16xf32> -> vector<2x8x16xf32>
    "tpu.trace_stop"() : () -> ()
    %cst_17 = arith.constant 0.0883883461 : f32
    %22 = vector.broadcast %cst_17 : f32 to vector<2x8x16xf32>
    %23 = arith.mulf %21, %22 : vector<2x8x16xf32>
    %cst_18 = arith.constant dense<0xFF800000> : vector<2x8xf32>
    %24 = vector.multi_reduction <maximumf>, %23, %cst_18 [2] : vector<2x8x16xf32> to vector<2x8xf32>
    %25 = vector.shape_cast %24 : vector<2x8xf32> to vector<2x8x1xf32>
    %26 = vector.broadcast %25 : vector<2x8x1xf32> to vector<2x8x16xf32>
    %27 = arith.subf %23, %26 : vector<2x8x16xf32>
    %28 = math.exp %27 : vector<2x8x16xf32>
    %cst_19 = arith.constant dense<0.000000e+00> : vector<2x8xf32>
    %29 = vector.multi_reduction <add>, %28, %cst_19 [2] : vector<2x8x16xf32> to vector<2x8xf32>
    %30 = vector.shape_cast %29 : vector<2x8xf32> to vector<2x8x1xf32>
    %31 = tpu.reciprocal %30 {approx = true} : vector<2x8x1xf32> -> vector<2x8x1xf32>
    %32 = vector.broadcast %31 : vector<2x8x1xf32> to vector<2x8x16xf32>
    %33 = arith.mulf %28, %32 : vector<2x8x16xf32>
    %34 = arith.truncf %33 : vector<2x8x16xf32> to vector<2x8x16xbf16>
    "tpu.trace_start"() <{level = 10 : i32, message = "bqk,bkd->bqd"}> : () -> ()
    %cst_20 = arith.constant dense<0.000000e+00> : vector<2x8x16xf32>
    %35 = tpu.matmul %34, %19, %cst_20 {dimension_numbers = #tpu.dot_dimension_numbers<[2], [1], [1], [2], [0, 0, 0, 1, 1, 2], [0], [0]>} : vector<2x8x16xbf16>, vector<2x16x16xbf16>, vector<2x8x16xf32> -> vector<2x8x16xf32>
    "tpu.trace_stop"() : () -> ()
    %36 = arith.addf %17, %35 : vector<2x8x16xf32>
    %c0_21 = arith.constant 0 : index
    %c0_22 = arith.constant 0 : index
    %c0_23 = arith.constant 0 : index
    %37 = vector.load %arg14[%c0_21, %c0_22, %c0_23] : memref<2x8x128xf32, #tpu.memory_space<vmem>>, vector<2x8x16xf32>
    tpu.vector_store %arg14[%c0_21, %c0_22, %c0_23], %36 {strides = array<i32>} : memref<2x8x128xf32, #tpu.memory_space<vmem>>, vector<2x8x16xf32>,
    %38 = vector.extract_strided_slice %12 {offsets = [0, 0, 16], sizes = [2, 8, 16], strides = [1, 1, 1]} : vector<2x8x128xf32> to vector<2x8x16xf32>
    %39 = vector.extract_strided_slice %14 {offsets = [0, 0, 16], sizes = [2, 16, 16], strides = [1, 1, 1]} : vector<2x16x128xbf16> to vector<2x16x16xbf16>
    %40 = vector.extract_strided_slice %16 {offsets = [0, 0, 16], sizes = [2, 16, 16], strides = [1, 1, 1]} : vector<2x16x128xbf16> to vector<2x16x16xbf16>
    %41 = arith.truncf %38 : vector<2x8x16xf32> to vector<2x8x16xbf16>
    "tpu.trace_start"() <{level = 10 : i32, message = "bqd,bkd->bqk"}> : () -> ()
    %cst_24 = arith.constant dense<0.000000e+00> : vector<2x8x16xf32>
    %42 = tpu.matmul %41, %39, %cst_24 {dimension_numbers = #tpu.dot_dimension_numbers<[2], [2], [1], [1], [0, 0, 0, 1, 1, 1], [0], [0]>} : vector<2x8x16xbf16>, vector<2x16x16xbf16>, vector<2x8x16xf32> -> vector<2x8x16xf32>
    "tpu.trace_stop"() : () -> ()
    %cst_25 = arith.constant 0.0883883461 : f32
    %43 = vector.broadcast %cst_25 : f32 to vector<2x8x16xf32>
    %44 = arith.mulf %42, %43 : vector<2x8x16xf32>
    %cst_26 = arith.constant dense<0xFF800000> : vector<2x8xf32>
    %45 = vector.multi_reduction <maximumf>, %44, %cst_26 [2] : vector<2x8x16xf32> to vector<2x8xf32>
    %46 = vector.shape_cast %45 : vector<2x8xf32> to vector<2x8x1xf32>
    %47 = vector.broadcast %46 : vector<2x8x1xf32> to vector<2x8x16xf32>
    %48 = arith.subf %44, %47 : vector<2x8x16xf32>
    %49 = math.exp %48 : vector<2x8x16xf32>
    %cst_27 = arith.constant dense<0.000000e+00> : vector<2x8xf32>
    %50 = vector.multi_reduction <add>, %49, %cst_27 [2] : vector<2x8x16xf32> to vector<2x8xf32>
    %51 = vector.shape_cast %50 : vector<2x8xf32> to vector<2x8x1xf32>
    %52 = tpu.reciprocal %51 {approx = true} : vector<2x8x1xf32> -> vector<2x8x1xf32>
    %53 = vector.broadcast %52 : vector<2x8x1xf32> to vector<2x8x16xf32>
    %54 = arith.mulf %49, %53 : vector<2x8x16xf32>
    %55 = arith.truncf %54 : vector<2x8x16xf32> to vector<2x8x16xbf16>
    "tpu.trace_start"() <{level = 10 : i32, message = "bqk,bkd->bqd"}> : () -> ()
    %cst_28 = arith.constant dense<0.000000e+00> : vector<2x8x16xf32>
    %56 = tpu.matmul %55, %40, %cst_28 {dimension_numbers = #tpu.dot_dimension_numbers<[2], [1], [1], [2], [0, 0, 0, 1, 1, 2], [0], [0]>} : vector<2x8x16xbf16>, vector<2x16x16xbf16>, vector<2x8x16xf32> -> vector<2x8x16xf32>
    "tpu.trace_stop"() : () -> ()
    %57 = arith.addf %38, %56 : vector<2x8x16xf32>
    %c0_29 = arith.constant 0 : index
    %c0_30 = arith.constant 0 : index
    %c16 = arith.constant 16 : index
    %58 = vector.load %arg14[%c0_29, %c0_30, %c16] : memref<2x8x128xf32, #tpu.memory_space<vmem>>, vector<2x8x16xf32>
    tpu.vector_store %arg14[%c0_29, %c0_30, %c16], %57 {strides = array<i32>} : memref<2x8x128xf32, #tpu.memory_space<vmem>>, vector<2x8x16xf32>,
    %59 = vector.extract_strided_slice %12 {offsets = [0, 0, 32], sizes = [2, 8, 16], strides = [1, 1, 1]} : vector<2x8x128xf32> to vector<2x8x16xf32>
    %60 = vector.extract_strided_slice %14 {offsets = [0, 0, 32], sizes = [2, 16, 16], strides = [1, 1, 1]} : vector<2x16x128xbf16> to vector<2x16x16xbf16>
    %61 = vector.extract_strided_slice %16 {offsets = [0, 0, 32], sizes = [2, 16, 16], strides = [1, 1, 1]} : vector<2x16x128xbf16> to vector<2x16x16xbf16>
    %62 = arith.truncf %59 : vector<2x8x16xf32> to vector<2x8x16xbf16>
    "tpu.trace_start"() <{level = 10 : i32, message = "bqd,bkd->bqk"}> : () -> ()
    %cst_31 = arith.constant dense<0.000000e+00> : vector<2x8x16xf32>
    %63 = tpu.matmul %62, %60, %cst_31 {dimension_numbers = #tpu.dot_dimension_numbers<[2], [2], [1], [1], [0, 0, 0, 1, 1, 1], [0], [0]>} : vector<2x8x16xbf16>, vector<2x16x16xbf16>, vector<2x8x16xf32> -> vector<2x8x16xf32>
    "tpu.trace_stop"() : () -> ()
    %cst_32 = arith.constant 0.0883883461 : f32
    %64 = vector.broadcast %cst_32 : f32 to vector<2x8x16xf32>
    %65 = arith.mulf %63, %64 : vector<2x8x16xf32>
    %cst_33 = arith.constant dense<0xFF800000> : vector<2x8xf32>
    %66 = vector.multi_reduction <maximumf>, %65, %cst_33 [2] : vector<2x8x16xf32> to vector<2x8xf32>
    %67 = vector.shape_cast %66 : vector<2x8xf32> to vector<2x8x1xf32>
    %68 = vector.broadcast %67 : vector<2x8x1xf32> to vector<2x8x16xf32>
    %69 = arith.subf %65, %68 : vector<2x8x16xf32>
    %70 = math.exp %69 : vector<2x8x16xf32>
    %cst_34 = arith.constant dense<0.000000e+00> : vector<2x8xf32>
    %71 = vector.multi_reduction <add>, %70, %cst_34 [2] : vector<2x8x16xf32> to vector<2x8xf32>
    %72 = vector.shape_cast %71 : vector<2x8xf32> to vector<2x8x1xf32>
    %73 = tpu.reciprocal %72 {approx = true} : vector<2x8x1xf32> -> vector<2x8x1xf32>
    %74 = vector.broadcast %73 : vector<2x8x1xf32> to vector<2x8x16xf32>
    %75 = arith.mulf %70, %74 : vector<2x8x16xf32>
    %76 = arith.truncf %75 : vector<2x8x16xf32> to vector<2x8x16xbf16>
    "tpu.trace_start"() <{level = 10 : i32, message = "bqk,bkd->bqd"}> : () -> ()
    %cst_35 = arith.constant dense<0.000000e+00> : vector<2x8x16xf32>
    %77 = tpu.matmul %76, %61, %cst_35 {dimension_numbers = #tpu.dot_dimension_numbers<[2], [1], [1], [2], [0, 0, 0, 1, 1, 2], [0], [0]>} : vector<2x8x16xbf16>, vector<2x16x16xbf16>, vector<2x8x16xf32> -> vector<2x8x16xf32>
    "tpu.trace_stop"() : () -> ()
    %78 = arith.addf %59, %77 : vector<2x8x16xf32>
    %c0_36 = arith.constant 0 : index
    %c0_37 = arith.constant 0 : index
    %c32 = arith.constant 32 : index
    %79 = vector.load %arg14[%c0_36, %c0_37, %c32] : memref<2x8x128xf32, #tpu.memory_space<vmem>>, vector<2x8x16xf32>
    tpu.vector_store %arg14[%c0_36, %c0_37, %c32], %78 {strides = array<i32>} : memref<2x8x128xf32, #tpu.memory_space<vmem>>, vector<2x8x16xf32>,
    %80 = vector.extract_strided_slice %12 {offsets = [0, 0, 48], sizes = [2, 8, 16], strides = [1, 1, 1]} : vector<2x8x128xf32> to vector<2x8x16xf32>
    %81 = vector.extract_strided_slice %14 {offsets = [0, 0, 48], sizes = [2, 16, 16], strides = [1, 1, 1]} : vector<2x16x128xbf16> to vector<2x16x16xbf16>
    %82 = vector.extract_strided_slice %16 {offsets = [0, 0, 48], sizes = [2, 16, 16], strides = [1, 1, 1]} : vector<2x16x128xbf16> to vector<2x16x16xbf16>
    %83 = arith.truncf %80 : vector<2x8x16xf32> to vector<2x8x16xbf16>
    "tpu.trace_start"() <{level = 10 : i32, message = "bqd,bkd->bqk"}> : () -> ()
    %cst_38 = arith.constant dense<0.000000e+00> : vector<2x8x16xf32>
    %84 = tpu.matmul %83, %81, %cst_38 {dimension_numbers = #tpu.dot_dimension_numbers<[2], [2], [1], [1], [0, 0, 0, 1, 1, 1], [0], [0]>} : vector<2x8x16xbf16>, vector<2x16x16xbf16>, vector<2x8x16xf32> -> vector<2x8x16xf32>
    "tpu.trace_stop"() : () -> ()
    %cst_39 = arith.constant 0.0883883461 : f32
    %85 = vector.broadcast %cst_39 : f32 to vector<2x8x16xf32>
    %86 = arith.mulf %84, %85 : vector<2x8x16xf32>
    %cst_40 = arith.constant dense<0xFF800000> : vector<2x8xf32>
    %87 = vector.multi_reduction <maximumf>, %86, %cst_40 [2] : vector<2x8x16xf32> to vector<2x8xf32>
    %88 = vector.shape_cast %87 : vector<2x8xf32> to vector<2x8x1xf32>
    %89 = vector.broadcast %88 : vector<2x8x1xf32> to vector<2x8x16xf32>
    %90 = arith.subf %86, %89 : vector<2x8x16xf32>
    %91 = math.exp %90 : vector<2x8x16xf32>
    %cst_41 = arith.constant dense<0.000000e+00> : vector<2x8xf32>
    %92 = vector.multi_reduction <add>, %91, %cst_41 [2] : vector<2x8x16xf32> to vector<2x8xf32>
    %93 = vector.shape_cast %92 : vector<2x8xf32> to vector<2x8x1xf32>
    %94 = tpu.reciprocal %93 {approx = true} : vector<2x8x1xf32> -> vector<2x8x1xf32>
    %95 = vector.broadcast %94 : vector<2x8x1xf32> to vector<2x8x16xf32>
    %96 = arith.mulf %91, %95 : vector<2x8x16xf32>
    %97 = arith.truncf %96 : vector<2x8x16xf32> to vector<2x8x16xbf16>
    "tpu.trace_start"() <{level = 10 : i32, message = "bqk,bkd->bqd"}> : () -> ()
    %cst_42 = arith.constant dense<0.000000e+00> : vector<2x8x16xf32>
    %98 = tpu.matmul %97, %82, %cst_42 {dimension_numbers = #tpu.dot_dimension_numbers<[2], [1], [1], [2], [0, 0, 0, 1, 1, 2], [0], [0]>} : vector<2x8x16xbf16>, vector<2x16x16xbf16>, vector<2x8x16xf32> -> vector<2x8x16xf32>
    "tpu.trace_stop"() : () -> ()
    %99 = arith.addf %80, %98 : vector<2x8x16xf32>
    %c0_43 = arith.constant 0 : index
    %c0_44 = arith.constant 0 : index
    %c48 = arith.constant 48 : index
    %100 = vector.load %arg14[%c0_43, %c0_44, %c48] : memref<2x8x128xf32, #tpu.memory_space<vmem>>, vector<2x8x16xf32>
    tpu.vector_store %arg14[%c0_43, %c0_44, %c48], %99 {strides = array<i32>} : memref<2x8x128xf32, #tpu.memory_space<vmem>>, vector<2x8x16xf32>,
    %101 = vector.extract_strided_slice %12 {offsets = [0, 0, 64], sizes = [2, 8, 16], strides = [1, 1, 1]} : vector<2x8x128xf32> to vector<2x8x16xf32>
    %102 = vector.extract_strided_slice %14 {offsets = [0, 0, 64], sizes = [2, 16, 16], strides = [1, 1, 1]} : vector<2x16x128xbf16> to vector<2x16x16xbf16>
    %103 = vector.extract_strided_slice %16 {offsets = [0, 0, 64], sizes = [2, 16, 16], strides = [1, 1, 1]} : vector<2x16x128xbf16> to vector<2x16x16xbf16>
    %104 = arith.truncf %101 : vector<2x8x16xf32> to vector<2x8x16xbf16>
    "tpu.trace_start"() <{level = 10 : i32, message = "bqd,bkd->bqk"}> : () -> ()
    %cst_45 = arith.constant dense<0.000000e+00> : vector<2x8x16xf32>
    %105 = tpu.matmul %104, %102, %cst_45 {dimension_numbers = #tpu.dot_dimension_numbers<[2], [2], [1], [1], [0, 0, 0, 1, 1, 1], [0], [0]>} : vector<2x8x16xbf16>, vector<2x16x16xbf16>, vector<2x8x16xf32> -> vector<2x8x16xf32>
    "tpu.trace_stop"() : () -> ()
    %cst_46 = arith.constant 0.0883883461 : f32
    %106 = vector.broadcast %cst_46 : f32 to vector<2x8x16xf32>
    %107 = arith.mulf %105, %106 : vector<2x8x16xf32>
    %cst_47 = arith.constant dense<0xFF800000> : vector<2x8xf32>
    %108 = vector.multi_reduction <maximumf>, %107, %cst_47 [2] : vector<2x8x16xf32> to vector<2x8xf32>
    %109 = vector.shape_cast %108 : vector<2x8xf32> to vector<2x8x1xf32>
    %110 = vector.broadcast %109 : vector<2x8x1xf32> to vector<2x8x16xf32>
    %111 = arith.subf %107, %110 : vector<2x8x16xf32>
    %112 = math.exp %111 : vector<2x8x16xf32>
    %cst_48 = arith.constant dense<0.000000e+00> : vector<2x8xf32>
    %113 = vector.multi_reduction <add>, %112, %cst_48 [2] : vector<2x8x16xf32> to vector<2x8xf32>
    %114 = vector.shape_cast %113 : vector<2x8xf32> to vector<2x8x1xf32>
    %115 = tpu.reciprocal %114 {approx = true} : vector<2x8x1xf32> -> vector<2x8x1xf32>
    %116 = vector.broadcast %115 : vector<2x8x1xf32> to vector<2x8x16xf32>
    %117 = arith.mulf %112, %116 : vector<2x8x16xf32>
    %118 = arith.truncf %117 : vector<2x8x16xf32> to vector<2x8x16xbf16>
    "tpu.trace_start"() <{level = 10 : i32, message = "bqk,bkd->bqd"}> : () -> ()
    %cst_49 = arith.constant dense<0.000000e+00> : vector<2x8x16xf32>
    %119 = tpu.matmul %118, %103, %cst_49 {dimension_numbers = #tpu.dot_dimension_numbers<[2], [1], [1], [2], [0, 0, 0, 1, 1, 2], [0], [0]>} : vector<2x8x16xbf16>, vector<2x16x16xbf16>, vector<2x8x16xf32> -> vector<2x8x16xf32>
    "tpu.trace_stop"() : () -> ()
    %120 = arith.addf %101, %119 : vector<2x8x16xf32>
    %c0_50 = arith.constant 0 : index
    %c0_51 = arith.constant 0 : index
    %c64 = arith.constant 64 : index
    %121 = vector.load %arg14[%c0_50, %c0_51, %c64] : memref<2x8x128xf32, #tpu.memory_space<vmem>>, vector<2x8x16xf32>
    tpu.vector_store %arg14[%c0_50, %c0_51, %c64], %120 {strides = array<i32>} : memref<2x8x128xf32, #tpu.memory_space<vmem>>, vector<2x8x16xf32>,
    %122 = vector.extract_strided_slice %12 {offsets = [0, 0, 80], sizes = [2, 8, 16], strides = [1, 1, 1]} : vector<2x8x128xf32> to vector<2x8x16xf32>
    %123 = vector.extract_strided_slice %14 {offsets = [0, 0, 80], sizes = [2, 16, 16], strides = [1, 1, 1]} : vector<2x16x128xbf16> to vector<2x16x16xbf16>
    %124 = vector.extract_strided_slice %16 {offsets = [0, 0, 80], sizes = [2, 16, 16], strides = [1, 1, 1]} : vector<2x16x128xbf16> to vector<2x16x16xbf16>
    %125 = arith.truncf %122 : vector<2x8x16xf32> to vector<2x8x16xbf16>
    "tpu.trace_start"() <{level = 10 : i32, message = "bqd,bkd->bqk"}> : () -> ()
    %cst_52 = arith.constant dense<0.000000e+00> : vector<2x8x16xf32>
    %126 = tpu.matmul %125, %123, %cst_52 {dimension_numbers = #tpu.dot_dimension_numbers<[2], [2], [1], [1], [0, 0, 0, 1, 1, 1], [0], [0]>} : vector<2x8x16xbf16>, vector<2x16x16xbf16>, vector<2x8x16xf32> -> vector<2x8x16xf32>
    "tpu.trace_stop"() : () -> ()
    %cst_53 = arith.constant 0.0883883461 : f32
    %127 = vector.broadcast %cst_53 : f32 to vector<2x8x16xf32>
    %128 = arith.mulf %126, %127 : vector<2x8x16xf32>
    %cst_54 = arith.constant dense<0xFF800000> : vector<2x8xf32>
    %129 = vector.multi_reduction <maximumf>, %128, %cst_54 [2] : vector<2x8x16xf32> to vector<2x8xf32>
    %130 = vector.shape_cast %129 : vector<2x8xf32> to vector<2x8x1xf32>
    %131 = vector.broadcast %130 : vector<2x8x1xf32> to vector<2x8x16xf32>
    %132 = arith.subf %128, %131 : vector<2x8x16xf32>
    %133 = math.exp %132 : vector<2x8x16xf32>
    %cst_55 = arith.constant dense<0.000000e+00> : vector<2x8xf32>
    %134 = vector.multi_reduction <add>, %133, %cst_55 [2] : vector<2x8x16xf32> to vector<2x8xf32>
    %135 = vector.shape_cast %134 : vector<2x8xf32> to vector<2x8x1xf32>
    %136 = tpu.reciprocal %135 {approx = true} : vector<2x8x1xf32> -> vector<2x8x1xf32>
    %137 = vector.broadcast %136 : vector<2x8x1xf32> to vector<2x8x16xf32>
    %138 = arith.mulf %133, %137 : vector<2x8x16xf32>
    %139 = arith.truncf %138 : vector<2x8x16xf32> to vector<2x8x16xbf16>
    "tpu.trace_start"() <{level = 10 : i32, message = "bqk,bkd->bqd"}> : () -> ()
    %cst_56 = arith.constant dense<0.000000e+00> : vector<2x8x16xf32>
    %140 = tpu.matmul %139, %124, %cst_56 {dimension_numbers = #tpu.dot_dimension_numbers<[2], [1], [1], [2], [0, 0, 0, 1, 1, 2], [0], [0]>} : vector<2x8x16xbf16>, vector<2x16x16xbf16>, vector<2x8x16xf32> -> vector<2x8x16xf32>
    "tpu.trace_stop"() : () -> ()
    %141 = arith.addf %122, %140 : vector<2x8x16xf32>
    %c0_57 = arith.constant 0 : index
    %c0_58 = arith.constant 0 : index
    %c80 = arith.constant 80 : index
    %142 = vector.load %arg14[%c0_57, %c0_58, %c80] : memref<2x8x128xf32, #tpu.memory_space<vmem>>, vector<2x8x16xf32>
    tpu.vector_store %arg14[%c0_57, %c0_58, %c80], %141 {strides = array<i32>} : memref<2x8x128xf32, #tpu.memory_space<vmem>>, vector<2x8x16xf32>,
    %143 = vector.extract_strided_slice %12 {offsets = [0, 0, 96], sizes = [2, 8, 16], strides = [1, 1, 1]} : vector<2x8x128xf32> to vector<2x8x16xf32>
    %144 = vector.extract_strided_slice %14 {offsets = [0, 0, 96], sizes = [2, 16, 16], strides = [1, 1, 1]} : vector<2x16x128xbf16> to vector<2x16x16xbf16>
    %145 = vector.extract_strided_slice %16 {offsets = [0, 0, 96], sizes = [2, 16, 16], strides = [1, 1, 1]} : vector<2x16x128xbf16> to vector<2x16x16xbf16>
    %146 = arith.truncf %143 : vector<2x8x16xf32> to vector<2x8x16xbf16>
    "tpu.trace_start"() <{level = 10 : i32, message = "bqd,bkd->bqk"}> : () -> ()
    %cst_59 = arith.constant dense<0.000000e+00> : vector<2x8x16xf32>
    %147 = tpu.matmul %146, %144, %cst_59 {dimension_numbers = #tpu.dot_dimension_numbers<[2], [2], [1], [1], [0, 0, 0, 1, 1, 1], [0], [0]>} : vector<2x8x16xbf16>, vector<2x16x16xbf16>, vector<2x8x16xf32> -> vector<2x8x16xf32>
    "tpu.trace_stop"() : () -> ()
    %cst_60 = arith.constant 0.0883883461 : f32
    %148 = vector.broadcast %cst_60 : f32 to vector<2x8x16xf32>
    %149 = arith.mulf %147, %148 : vector<2x8x16xf32>
    %cst_61 = arith.constant dense<0xFF800000> : vector<2x8xf32>
    %150 = vector.multi_reduction <maximumf>, %149, %cst_61 [2] : vector<2x8x16xf32> to vector<2x8xf32>
    %151 = vector.shape_cast %150 : vector<2x8xf32> to vector<2x8x1xf32>
    %152 = vector.broadcast %151 : vector<2x8x1xf32> to vector<2x8x16xf32>
    %153 = arith.subf %149, %152 : vector<2x8x16xf32>
    %154 = math.exp %153 : vector<2x8x16xf32>
    %cst_62 = arith.constant dense<0.000000e+00> : vector<2x8xf32>
    %155 = vector.multi_reduction <add>, %154, %cst_62 [2] : vector<2x8x16xf32> to vector<2x8xf32>
    %156 = vector.shape_cast %155 : vector<2x8xf32> to vector<2x8x1xf32>
    %157 = tpu.reciprocal %156 {approx = true} : vector<2x8x1xf32> -> vector<2x8x1xf32>
    %158 = vector.broadcast %157 : vector<2x8x1xf32> to vector<2x8x16xf32>
    %159 = arith.mulf %154, %158 : vector<2x8x16xf32>
    %160 = arith.truncf %159 : vector<2x8x16xf32> to vector<2x8x16xbf16>
    "tpu.trace_start"() <{level = 10 : i32, message = "bqk,bkd->bqd"}> : () -> ()
    %cst_63 = arith.constant dense<0.000000e+00> : vector<2x8x16xf32>
    %161 = tpu.matmul %160, %145, %cst_63 {dimension_numbers = #tpu.dot_dimension_numbers<[2], [1], [1], [2], [0, 0, 0, 1, 1, 2], [0], [0]>} : vector<2x8x16xbf16>, vector<2x16x16xbf16>, vector<2x8x16xf32> -> vector<2x8x16xf32>
    "tpu.trace_stop"() : () -> ()
    %162 = arith.addf %143, %161 : vector<2x8x16xf32>
    %c0_64 = arith.constant 0 : index
    %c0_65 = arith.constant 0 : index
    %c96 = arith.constant 96 : index
    %163 = vector.load %arg14[%c0_64, %c0_65, %c96] : memref<2x8x128xf32, #tpu.memory_space<vmem>>, vector<2x8x16xf32>
    tpu.vector_store %arg14[%c0_64, %c0_65, %c96], %162 {strides = array<i32>} : memref<2x8x128xf32, #tpu.memory_space<vmem>>, vector<2x8x16xf32>,
    %164 = vector.extract_strided_slice %12 {offsets = [0, 0, 112], sizes = [2, 8, 16], strides = [1, 1, 1]} : vector<2x8x128xf32> to vector<2x8x16xf32>
    %165 = vector.extract_strided_slice %14 {offsets = [0, 0, 112], sizes = [2, 16, 16], strides = [1, 1, 1]} : vector<2x16x128xbf16> to vector<2x16x16xbf16>
    %166 = vector.extract_strided_slice %16 {offsets = [0, 0, 112], sizes = [2, 16, 16], strides = [1, 1, 1]} : vector<2x16x128xbf16> to vector<2x16x16xbf16>
    %167 = arith.truncf %164 : vector<2x8x16xf32> to vector<2x8x16xbf16>
    "tpu.trace_start"() <{level = 10 : i32, message = "bqd,bkd->bqk"}> : () -> ()
    %cst_66 = arith.constant dense<0.000000e+00> : vector<2x8x16xf32>
    %168 = tpu.matmul %167, %165, %cst_66 {dimension_numbers = #tpu.dot_dimension_numbers<[2], [2], [1], [1], [0, 0, 0, 1, 1, 1], [0], [0]>} : vector<2x8x16xbf16>, vector<2x16x16xbf16>, vector<2x8x16xf32> -> vector<2x8x16xf32>
    "tpu.trace_stop"() : () -> ()
    %cst_67 = arith.constant 0.0883883461 : f32
    %169 = vector.broadcast %cst_67 : f32 to vector<2x8x16xf32>
    %170 = arith.mulf %168, %169 : vector<2x8x16xf32>
    %cst_68 = arith.constant dense<0xFF800000> : vector<2x8xf32>
    %171 = vector.multi_reduction <maximumf>, %170, %cst_68 [2] : vector<2x8x16xf32> to vector<2x8xf32>
    %172 = vector.shape_cast %171 : vector<2x8xf32> to vector<2x8x1xf32>
    %173 = vector.broadcast %172 : vector<2x8x1xf32> to vector<2x8x16xf32>
    %174 = arith.subf %170, %173 : vector<2x8x16xf32>
    %175 = math.exp %174 : vector<2x8x16xf32>
    %cst_69 = arith.constant dense<0.000000e+00> : vector<2x8xf32>
    %176 = vector.multi_reduction <add>, %175, %cst_69 [2] : vector<2x8x16xf32> to vector<2x8xf32>
    %177 = vector.shape_cast %176 : vector<2x8xf32> to vector<2x8x1xf32>
    %178 = tpu.reciprocal %177 {approx = true} : vector<2x8x1xf32> -> vector<2x8x1xf32>
    %179 = vector.broadcast %178 : vector<2x8x1xf32> to vector<2x8x16xf32>
    %180 = arith.mulf %175, %179 : vector<2x8x16xf32>
    %181 = arith.truncf %180 : vector<2x8x16xf32> to vector<2x8x16xbf16>
    "tpu.trace_start"() <{level = 10 : i32, message = "bqk,bkd->bqd"}> : () -> ()
    %cst_70 = arith.constant dense<0.000000e+00> : vector<2x8x16xf32>
    %182 = tpu.matmul %181, %166, %cst_70 {dimension_numbers = #tpu.dot_dimension_numbers<[2], [1], [1], [2], [0, 0, 0, 1, 1, 2], [0], [0]>} : vector<2x8x16xbf16>, vector<2x16x16xbf16>, vector<2x8x16xf32> -> vector<2x8x16xf32>
    "tpu.trace_stop"() : () -> ()
    %183 = arith.addf %164, %182 : vector<2x8x16xf32>
    %c0_71 = arith.constant 0 : index
    %c0_72 = arith.constant 0 : index
    %c112 = arith.constant 112 : index
    %184 = vector.load %arg14[%c0_71, %c0_72, %c112] : memref<2x8x128xf32, #tpu.memory_space<vmem>>, vector<2x8x16xf32>
    tpu.vector_store %arg14[%c0_71, %c0_72, %c112], %183 {strides = array<i32>} : memref<2x8x128xf32, #tpu.memory_space<vmem>>, vector<2x8x16xf32>,
    %c0_73 = arith.constant 0 : index
    %c0_74 = arith.constant 0 : index
    %c0_75 = arith.constant 0 : index
    %185 = vector.load %arg14[%c0_73, %c0_74, %c0_75] : memref<2x8x128xf32, #tpu.memory_space<vmem>>, vector<2x8x128xf32>
    %186 = vector.shape_cast %185 : vector<2x8x128xf32> to vector<16x128xf32>
    %cst_76 = arith.constant dense<0.000000e+00> : vector<16xf32>
    %187 = vector.multi_reduction <add>, %186, %cst_76 [1] : vector<16x128xf32> to vector<16xf32>
    %188 = vector.shape_cast %187 : vector<16xf32> to vector<16x1xf32>
    %cst_77 = arith.constant 1.280000e+02 : f32
    %189 = vector.broadcast %cst_77 : f32 to vector<16x1xf32>
    %190 = arith.divf %188, %189 : vector<16x1xf32>
    %191 = arith.mulf %186, %186 : vector<16x128xf32>
    %cst_78 = arith.constant dense<0.000000e+00> : vector<16xf32>
    %192 = vector.multi_reduction <add>, %191, %cst_78 [1] : vector<16x128xf32> to vector<16xf32>
    %193 = vector.shape_cast %192 : vector<16xf32> to vector<16x1xf32>
    %cst_79 = arith.constant 1.280000e+02 : f32
    %194 = vector.broadcast %cst_79 : f32 to vector<16x1xf32>
    %195 = arith.divf %193, %194 : vector<16x1xf32>
    %196 = arith.mulf %190, %190 : vector<16x1xf32>
    %197 = arith.subf %195, %196 : vector<16x1xf32>
    %cst_80 = arith.constant 0.000000e+00 : f32
    %198 = vector.broadcast %cst_80 : f32 to vector<16x1xf32>
    %199 = arith.maximumf %197, %198 : vector<16x1xf32>
    %200 = vector.broadcast %190 : vector<16x1xf32> to vector<16x128xf32>
    %201 = arith.subf %186, %200 : vector<16x128xf32>
    %cst_81 = arith.constant 9.99999974E-6 : f32
    %202 = vector.broadcast %cst_81 : f32 to vector<16x1xf32>
    %203 = arith.addf %199, %202 : vector<16x1xf32>
    %204 = math.rsqrt %203 : vector<16x1xf32>
    %205 = vector.broadcast %204 : vector<16x1xf32> to vector<16x128xf32>
    %206 = arith.mulf %201, %205 : vector<16x128xf32>
    %c0_82 = arith.constant 0 : index
    %c0_83 = arith.constant 0 : index
    %207 = vector.load %arg9[%c0_82, %c0_83] : memref<1x128xf32, #tpu.memory_space<vmem>>, vector<1x128xf32>
    %208 = vector.broadcast %207 : vector<1x128xf32> to vector<16x128xf32>
    %209 = arith.mulf %206, %208 : vector<16x128xf32>
    %c0_84 = arith.constant 0 : index
    %c0_85 = arith.constant 0 : index
    %210 = vector.load %arg10[%c0_84, %c0_85] : memref<1x128xf32, #tpu.memory_space<vmem>>, vector<1x128xf32>
    %211 = vector.broadcast %210 : vector<1x128xf32> to vector<16x128xf32>
    %212 = arith.addf %209, %211 : vector<16x128xf32>
    %213 = arith.truncf %212 : vector<16x128xf32> to vector<16x128xbf16>
    %c0_86 = arith.constant 0 : index
    %c0_87 = arith.constant 0 : index
    %214 = vector.load %arg7[%c0_86, %c0_87] : memref<128x128xbf16, #tpu.memory_space<vmem>>, vector<128x128xbf16>
    %cst_88 = arith.constant dense<0.000000e+00> : vector<16x128xf32>
    %215 = tpu.matmul %213, %214, %cst_88 {dimension_numbers = #tpu.dot_dimension_numbers<[1], [0], [0], [1], [0, 0, 1, 1], [], []>} : vector<16x128xbf16>, vector<128x128xbf16>, vector<16x128xf32> -> vector<16x128xf32>
    %c0_89 = arith.constant 0 : index
    %c0_90 = arith.constant 0 : index
    %216 = vector.load %arg8[%c0_89, %c0_90] : memref<1x128xf32, #tpu.memory_space<vmem>>, vector<1x128xf32>
    %217 = vector.broadcast %216 : vector<1x128xf32> to vector<16x128xf32>
    %218 = arith.addf %215, %217 : vector<16x128xf32>
    %cst_91 = arith.constant 0.000000e+00 : f32
    %219 = vector.broadcast %cst_91 : f32 to vector<16x128xf32>
    %220 = arith.maximumf %218, %219 : vector<16x128xf32>
    %221 = arith.addf %212, %220 : vector<16x128xf32>
    %cst_92 = arith.constant dense<0.000000e+00> : vector<16xf32>
    %222 = vector.multi_reduction <add>, %221, %cst_92 [1] : vector<16x128xf32> to vector<16xf32>
    %223 = vector.shape_cast %222 : vector<16xf32> to vector<16x1xf32>
    %cst_93 = arith.constant 1.280000e+02 : f32
    %224 = vector.broadcast %cst_93 : f32 to vector<16x1xf32>
    %225 = arith.divf %223, %224 : vector<16x1xf32>
    %226 = arith.mulf %221, %221 : vector<16x128xf32>
    %cst_94 = arith.constant dense<0.000000e+00> : vector<16xf32>
    %227 = vector.multi_reduction <add>, %226, %cst_94 [1] : vector<16x128xf32> to vector<16xf32>
    %228 = vector.shape_cast %227 : vector<16xf32> to vector<16x1xf32>
    %cst_95 = arith.constant 1.280000e+02 : f32
    %229 = vector.broadcast %cst_95 : f32 to vector<16x1xf32>
    %230 = arith.divf %228, %229 : vector<16x1xf32>
    %231 = arith.mulf %225, %225 : vector<16x1xf32>
    %232 = arith.subf %230, %231 : vector<16x1xf32>
    %cst_96 = arith.constant 0.000000e+00 : f32
    %233 = vector.broadcast %cst_96 : f32 to vector<16x1xf32>
    %234 = arith.maximumf %232, %233 : vector<16x1xf32>
    %235 = vector.broadcast %225 : vector<16x1xf32> to vector<16x128xf32>
    %236 = arith.subf %221, %235 : vector<16x128xf32>
    %cst_97 = arith.constant 9.99999974E-6 : f32
    %237 = vector.broadcast %cst_97 : f32 to vector<16x1xf32>
    %238 = arith.addf %234, %237 : vector<16x1xf32>
    %239 = math.rsqrt %238 : vector<16x1xf32>
    %240 = vector.broadcast %239 : vector<16x1xf32> to vector<16x128xf32>
    %241 = arith.mulf %236, %240 : vector<16x128xf32>
    %c0_98 = arith.constant 0 : index
    %c0_99 = arith.constant 0 : index
    %242 = vector.load %arg11[%c0_98, %c0_99] : memref<1x128xf32, #tpu.memory_space<vmem>>, vector<1x128xf32>
    %243 = vector.broadcast %242 : vector<1x128xf32> to vector<16x128xf32>
    %244 = arith.mulf %241, %243 : vector<16x128xf32>
    %c0_100 = arith.constant 0 : index
    %c0_101 = arith.constant 0 : index
    %245 = vector.load %arg12[%c0_100, %c0_101] : memref<1x128xf32, #tpu.memory_space<vmem>>, vector<1x128xf32>
    %246 = vector.broadcast %245 : vector<1x128xf32> to vector<16x128xf32>
    %247 = arith.addf %244, %246 : vector<16x128xf32>
    %248 = vector.shape_cast %247 : vector<16x128xf32> to vector<2x8x128xf32>
    %c0_102 = arith.constant 0 : index
    %c0_103 = arith.constant 0 : index
    %c0_104 = arith.constant 0 : index
    %249 = vector.load %arg13[%c0_102, %c0_103, %c0_104] : memref<2x8x128xf32, #tpu.memory_space<vmem>>, vector<2x8x128xf32>
    tpu.vector_store %arg13[%c0_102, %c0_103, %c0_104], %248 {strides = array<i32>} : memref<2x8x128xf32, #tpu.memory_space<vmem>>, vector<2x8x128xf32>,
    return
  }
  func.func @transform_0(%arg0: i32) -> (i32, i32, i32) {
    %c0_i32 = arith.constant 0 : i32
    %c0_i32_0 = arith.constant 0 : i32
    %c0_i32_1 = arith.constant 0 : i32
    return %arg0, %c0_i32, %c0_i32_0 : i32, i32, i32
  }
  func.func @transform_1(%arg0: i32) -> (i32, i32, i32) {
    %c0_i32 = arith.constant 0 : i32
    %c0_i32_0 = arith.constant 0 : i32
    %c0_i32_1 = arith.constant 0 : i32
    return %arg0, %c0_i32, %c0_i32_0 : i32, i32, i32
  }
  func.func @transform_2(%arg0: i32) -> (i32, i32, i32) {
    %c0_i32 = arith.constant 0 : i32
    %c0_i32_0 = arith.constant 0 : i32
    %c0_i32_1 = arith.constant 0 : i32
    return %arg0, %c0_i32, %c0_i32_0 : i32, i32, i32
  }
  func.func @transform_3(%arg0: i32) -> (i32, i32) {
    %c0_i32 = arith.constant 0 : i32
    %c0_i32_0 = arith.constant 0 : i32
    %c0_i32_1 = arith.constant 0 : i32
    return %c0_i32, %c0_i32_0 : i32, i32
  }
  func.func @transform_4(%arg0: i32) -> (i32, i32) {
    %c0_i32 = arith.constant 0 : i32
    %c0_i32_0 = arith.constant 0 : i32
    %c0_i32_1 = arith.constant 0 : i32
    return %c0_i32, %c0_i32_0 : i32, i32
  }
  func.func @transform_5(%arg0: i32) -> (i32, i32) {
    %c0_i32 = arith.constant 0 : i32
    %c0_i32_0 = arith.constant 0 : i32
    %c0_i32_1 = arith.constant 0 : i32
    return %c0_i32, %c0_i32_0 : i32, i32
  }
  func.func @transform_6(%arg0: i32) -> (i32, i32) {
    %c0_i32 = arith.constant 0 : i32
    %c0_i32_0 = arith.constant 0 : i32
    %c0_i32_1 = arith.constant 0 : i32
    return %c0_i32, %c0_i32_0 : i32, i32
  }
  func.func @transform_7(%arg0: i32) -> (i32, i32) {
    %c0_i32 = arith.constant 0 : i32
    %c0_i32_0 = arith.constant 0 : i32
    %c0_i32_1 = arith.constant 0 : i32
    return %c0_i32, %c0_i32_0 : i32, i32
  }
  func.func @transform_8(%arg0: i32) -> (i32, i32) {
    %c0_i32 = arith.constant 0 : i32
    %c0_i32_0 = arith.constant 0 : i32
    %c0_i32_1 = arith.constant 0 : i32
    return %c0_i32, %c0_i32_0 : i32, i32
  }
  func.func @transform_9(%arg0: i32) -> (i32, i32) {
    %c0_i32 = arith.constant 0 : i32
    %c0_i32_0 = arith.constant 0 : i32
    %c0_i32_1 = arith.constant 0 : i32
    return %c0_i32, %c0_i32_0 : i32, i32
  }
  func.func @transform_10(%arg0: i32) -> (i32, i32) {
    %c0_i32 = arith.constant 0 : i32
    %c0_i32_0 = arith.constant 0 : i32
    %c0_i32_1 = arith.constant 0 : i32
    return %c0_i32, %c0_i32_0 : i32, i32
  }
  func.func @transform_11(%arg0: i32) -> (i32, i32) {
    %c0_i32 = arith.constant 0 : i32
    %c0_i32_0 = arith.constant 0 : i32
    %c0_i32_1 = arith.constant 0 : i32
    return %c0_i32, %c0_i32_0 : i32, i32
  }
  func.func @transform_12(%arg0: i32) -> (i32, i32, i32) {
    %c0_i32 = arith.constant 0 : i32
    %c0_i32_0 = arith.constant 0 : i32
    %c0_i32_1 = arith.constant 0 : i32
    return %arg0, %c0_i32, %c0_i32_0 : i32, i32, i32
  }
}

</mosaic_0001>

<bundles_post_ra>
// kernel: tpu_custom_call.1
= control target key start
LH: loop header
LB: loop body
LE: loop exit
PB: predicated region body
PF: predicated region fallthrough
CT: control target
= control target key end

     0   :  { %s4943_s0 = inlined_call_operand.hbm [shape: bf16[4,8,128], index: 0, kind: input, shape index: {}]   ;;  %s4944_s1 = inlined_call_operand.hbm [shape: bf16[4,16,128], index: 1, kind: input, shape index: {}]   ;;  %s4945_s2 = inlined_call_operand.hbm [shape: bf16[4,16,128], index: 2, kind: input, shape index: {}]   ;;  %s4946_s3 = inlined_call_operand.hbm [shape: bf16[128,128], index: 3, kind: input, shape index: {}]   ;;  %s4947_s4 = inlined_call_operand.hbm [shape: bf16[128,128], index: 4, kind: input, shape index: {}]   ;;  %s4948_s5 = inlined_call_operand.hbm [shape: bf16[128,128], index: 5, kind: input, shape index: {}]   ;;  %s4949_s6 = inlined_call_operand.hbm [shape: bf16[128,128], index: 6, kind: input, shape index: {}]   ;;  %s4950_s7 = inlined_call_operand.vmem [shape: f32[1,128], index: 7, kind: input, shape index: {}]   ;;  %s4951_s8 = inlined_call_operand.vmem [shape: f32[1,128], index: 8, kind: input, shape index: {}]   ;;  %s4952_s9 = inlined_call_operand.vmem [shape: f32[1,128], index: 9, kind: input, shape index: {}]   ;;  %s4953_s10 = inlined_call_operand.vmem [shape: f32[1,128], index: 10, kind: input, shape index: {}]   ;;  %s4954_s11 = inlined_call_operand.vmem [shape: f32[1,128], index: 11, kind: input, shape index: {}]   ;;  %s4955_s12 = inlined_call_operand.hbm [shape: f32[4,8,128], index: 12, kind: output, shape index: {}]  }
   0x1   :  { %4976 = sst [smem:[#allocation27_spill]] %s4944_s1 }
   0x2   :  { %4977 = sst [smem:[#allocation28_spill]] %s4946_s3 }
   0x3   :  { %4978 = sst [smem:[#allocation29_spill]] %s4947_s4 }
   0x4   :  { %4979 = sst [smem:[#allocation30_spill]] %s4948_s5 }
   0x5   :  { %4980 = sst [smem:[#allocation31_spill]] %s4953_s10 }
   0x6   :  { %4981 = sst [smem:[#allocation32_spill]] %s4954_s11 }
   0x7   :  { %4982 = sst [smem:[#allocation33_spill]] %s4955_s12 }
   0x8   :  { %17 = vsyncpa [#allocation4], 0 }
   0x9   :  { %19 = vsyncpa [#allocation4 + $0x1], 0 }
   0xa   :  { %20 = vsyncpa [#allocation7], 0 }
   0xb   :  { %22 = vsyncpa [#allocation7 + $0x1], 0 }
   0xc   :  { %23 = vsyncpa [#allocation10], 0 }
   0xd   :  { %24 = vsyncpa [#allocation13], 0 }
   0xe   :  { %25 = vsyncpa [#allocation5], 0 }
   0xf   :  { %27 = vsyncpa [#allocation5 + $0x1], 0  ;;  %s4222_s21 = smov 0   ;;  %s4224_s22 = smov 0  }
  0x10   :  { %s4226_s23 = smov 0   ;;  %s4228_s24 = smov 0  }
  0x11 LB: > { %4983 = sst [smem:[#allocation21_spill]] %s4122_s21  ;;  %s4243_s25 = sadd.s32 4294967295, %s4134_s24   ;;  %s4134_s24 = sphi %s4228_s24, %s5021_s24   ;;  %s4130_s23 = sphi %s4226_s23, %s5023_s23   ;;  %s4126_s22 = sphi %s4224_s22, %s5025_s22   ;;  %s4122_s21 = sphi %s4222_s21, %s5024_s21  }
  0x12   : > { %4984 = sst [smem:[#allocation22_spill]] %s4130_s23  ;;  %s3165_s26 = sadd.s32 4294967294, %s4134_s24  }
  0x13   : > { %p53_p0 = scmp.ne.s32.totalorder %s4126_s22, %s4122_s21  ;;  %p4969_p1 = scmp.eq.s32.totalorder %s4243_s25, 0 }
  0x14   : > { %p318_p2 = scmp.eq.s32.totalorder %s4243_s25, 1  ;;  %p324_p3 = scmp.eq.s32.totalorder %s3165_s26, 1 }
  0x15   : > { %p4252_p4 = por %p4969_p1, %p53_p0  ;;  %p3166_p5 = scmp.ge.s32.totalorder %s4134_s24, 1 }
  0x16   : > { %p4257_p6 = por %p324_p3, %p53_p0  ;;  %p331_p7 = scmp.lt.s32.totalorder %s4134_s24, 3 }
  0x17   : > { %s4985_s27 = scalar_select %p4252_p4, 1, 0 }
  0x18   : > { %s4986_s28 = scalar_select %p4257_p6, 1, 0 }
  0x19   : > { %p4262_p8 = pnand %p3166_p5, %p331_p7  ;;  %s4136_s30 = smov [#allocation9]  }
  0x1a   : > { %4987 = sst [smem:[#allocation23_spill]] %s4986_s28  ;;  %s343_s13 = sshll.u32 %s4136_s30, 4  ;;  %s344_s13 = int_to_ptr.vmem [resolvable:$true] %s343_s13 }
  0x1b   : > { %s4988_s29 = scalar_select %p4262_p8, 1, 0 }
  0x1c   : > { %p3675_p9 = pneg %p4262_p8  ;;  %s4137_s15 = smov [#allocation12]  }
  0x1d   : > { %s369_s16 = sshll.u32 %s4137_s15, 4  ;;  %s3881_s17 = scalar_lea.vmem %s344_s13, 1024  ;;  %s370_s16 = int_to_ptr.vmem [resolvable:$true] %s369_s16 }
  0x1e   : > { %p4271_p11 = pnand %p3675_p9, %p4969_p1  ;;  %p3882_p13 = scmp.ne.s32.totalorder %s344_s13, %s3881_s17 }
  0x1f   : > { %p3889_p5 = scmp.lt.s32.totalorder %s344_s13, %s344_s13  ;;  %p3890_p7 = scmp.lt.s32.totalorder %s3881_s17, %s3881_s17 }
  0x20   : > { %s4989_s14 = scalar_select %p4271_p11, 1, 0 }
  0x21   : > { %p4970_p12 = pneg %p4271_p11  ;;  %p3891_p10 = por %p3890_p7, %p3889_p5 }
  0x23   : > { %p3884_p0 = pnand %p3882_p13, %p4970_p12 }
  0x25   : > { %p3885_p3 = pneg %p3884_p0 }
  0x27   : > { %p3892_p9 = pnand %p3891_p10, %p3885_p3 }
  0x29   : > { %3895 = shalt.err (!%p3892_p9)
}
  0x2a   : > { %s4956_s18 = smov 64   ;;  %s4958_s19 = smov 4  }
  0x2b   : > { %s4990_s3 = sld [smem:[#allocation28_spill]]  ;;  %s3907_s30 = scalar_lea.vmem %s370_s16, 1024 }
  0x2c   : > { %p3908_p13 = scmp.ne.s32.totalorder %s370_s16, %s3907_s30  ;;  %p3915_p10 = scmp.lt.s32.totalorder %s370_s16, %s370_s16 }
  0x2d   : > { %p3916_p3 = scmp.lt.s32.totalorder %s3907_s30, %s3907_s30 }
  0x2e   : > { %p3910_p0 = pnand %p3908_p13, %p4970_p12 }
  0x2f   : > { %p3917_p7 = por %p3916_p3, %p3915_p10 }
  0x30   : > { %p3911_p5 = pneg %p3910_p0 }
  0x31   : > { %3678 = dma.hbm_to_vmem [thread:$0]  (!%p4271_p11), %s4990_s3, 1024, %s344_s13, [#allocation10], %s4956_s18, %s4956_s18, %s4958_s19  }
  0x32   : > { %p3918_p9 = pnand %p3917_p7, %p3911_p5 }
  0x34   : > { %3921 = shalt.err (!%p3918_p9)
}
  0x35   : > { %s4991_s5 = sld [smem:[#allocation30_spill]]  ;;  %s4300_s13 = sadd.s32 1, %s4134_s24  }
  0x36   : > { %4992 = sst [smem:[#allocation24_spill]] %s4300_s13  ;;  %s40_s20 = sadd.s32 1, %s4130_s23 }
  0x37   : > { %s37_s26 = ssub.s32 %s4134_s24, %s4300_s13  ;;  %p47_p13 = scmp.ne.s32.totalorder %s4130_s23, %s4126_s22 }
  0x38   : > { %p38_p0 = scmp.eq.s32.totalorder %s37_s26, 0  ;;  %p48_p5 = scmp.eq.s32.totalorder %s4134_s24, 0 }
  0x39   : > { %p4310_p10 = por %p318_p2, %p47_p13  ;;  %p3706_p3 = scmp.lt.s32.totalorder %s4134_s24, 2 }
  0x3a   : > { %s4316_s15 = scalar_select %p38_p0, %s4130_s23, %s40_s20  }
  0x3b   : > { %3684 = dma.hbm_to_vmem [thread:$0]  (!%p4271_p11), %s4991_s5, 1024, %s370_s16, [#allocation13], %s4956_s18, %s4956_s18, %s4958_s19  }
  0x3c   : > { %s4993_s30 = scalar_select %p4310_p10, 1, 0 }
  0x3d   : > { %4995 = sst [smem:[#allocation26_spill]] %s4316_s15  ;;  %p49_p7 = por %p48_p5, %p47_p13 }
  0x3e   : > { %4994 = sst [smem:[#allocation25_spill]] %s4993_s30  ;;  %s4319_s17 = sand.u32 1, %s4130_s23  }
  0x3f   : > { %s432_s16 = sand.u32 1, %s4134_s24   ;;  %s4968_s18 = sshll.u32 %s4319_s17, 4 }
  0x40   : > { %p4323_p9 = pnand %p3706_p3, %p49_p7  ;;  %s3273_s26 = sshll.u32 %s4134_s24, 8 }
  0x41   : > { %s4997_s1 = sld [smem:[#allocation27_spill]]  ;;  %s436_s20 = scalar_lea.vmem [#allocation6], %s4968_s18 }
  0x42   : > { %s444_s15 = sshll.u32 %s436_s20, 4  ;;  %s4340_s21 = scalar_lea.hbm %s4945_s2, %s3273_s26  ;;  %s4335_s15 = int_to_ptr.vmem [resolvable:$true] %s444_s15 }
  0x43   : > { %s4342_s12 = scalar_lea.sflag [#allocation7], %s432_s16  ;;  %p4348_p13 = pneg %p4323_p9 }
  0x47   : > { %s4331_s13 = scalar_lea.hbm %s4997_s1, %s3273_s26  ;;  %s3927_s18 = scalar_lea.hbm %s4997_s1, 512 }
  0x48   : > { %s3922_s30 = scalar_lea.hbm %s4331_s13, 256  ;;  %p3928_p3 = scmp.lt.s32.totalorder %s4331_s13, %s4997_s1 }
  0x49   : > { %p3923_p2 = scmp.ne.s32.totalorder %s4331_s13, %s3922_s30  ;;  %p3929_p7 = scmp.lt.s32.totalorder %s3927_s18, %s3922_s30 }
  0x4b   : > { %p3925_p0 = pnand %p4348_p13, %p3923_p2  ;;  %p3930_p1 = por %p3929_p7, %p3928_p3 }
  0x4d   : > { %p3926_p5 = pneg %p3925_p0 }
  0x4f   : > { %p3931_p12 = pnand %p3930_p1, %p3926_p5 }
  0x51   : > { %3934 = shalt.err (!%p3931_p12)
}
  0x52   : > { %s3935_s16 = scalar_lea.vmem %s4335_s15, 256  ;;  %s4140_s26 = smov [#allocation6]  }
  0x53   : > { %p3936_p6 = scmp.ne.s32.totalorder %s4335_s15, %s3935_s16  ;;  %s3940_s5 = sshll.u32 %s4140_s26, 4  ;;  %s3941_s5 = int_to_ptr.vmem [resolvable:$false] %s3940_s5 }
  0x54   : > { %s3942_s20 = scalar_lea.vmem %s3941_s5, 512  ;;  %p3943_p10 = scmp.lt.s32.totalorder %s4335_s15, %s3941_s5 }
  0x55   : > { %p3938_p2 = pnand %p3936_p6, %p4348_p13  ;;  %p3944_p4 = scmp.lt.s32.totalorder %s3942_s20, %s3935_s16 }
  0x57   : > { %p3939_p0 = pneg %p3938_p2  ;;  %p3945_p8 = por %p3944_p4, %p3943_p10 }
  0x59   : > { %p3946_p11 = pnand %p3945_p8, %p3939_p0 }
  0x5b   : > { %3949 = shalt.err (!%p3946_p11)
}
  0x5c   : > { %s4999_s18 = smov 4   ;;  %s5000_s30 = smov 64  }
  0x5d   : > { %3694 = dma.hbm_to_vmem [thread:$0]  (!%p4323_p9), %s4331_s13, 256, %s4335_s15, %s4342_s12, %s5000_s30, %s5000_s30, %s4999_s18  }
  0x5e   : > { %s5001_s23 = sshll.u32 %s4319_s17, 4  ;;  %s4141_s16 = smov [#allocation11]  }
  0x5f   : > { %s458_s28 = scalar_lea.vmem [#allocation8], %s5001_s23  ;;  %s356_s5 = sshll.u32 %s4141_s16, 4  ;;  %s357_s5 = int_to_ptr.vmem [resolvable:$true] %s356_s5 }
  0x60   : > { %s466_s26 = sshll.u32 %s458_s28, 4  ;;  %s3961_s20 = scalar_lea.vmem %s357_s5, 1024  ;;  %s4376_s26 = int_to_ptr.vmem [resolvable:$true] %s466_s26 }
  0x61   : > { %p3962_p1 = scmp.ne.s32.totalorder %s357_s5, %s3961_s20  ;;  %p5002_p4 = scmp.ne.s32.totalorder %s4989_s14, 0 }
  0x62   : > { %p3969_p12 = scmp.lt.s32.totalorder %s357_s5, %s357_s5  ;;  %p3970_p10 = scmp.lt.s32.totalorder %s3961_s20, %s3961_s20 }
  0x63   : > { %p5003_p6 = pneg %p5002_p4 }
  0x64   : > { %p3971_p5 = por %p3970_p10, %p3969_p12 }
  0x65   : > { %p3964_p8 = pnand %p3962_p1, %p5003_p6 }
  0x67   : > { %p3965_p11 = pneg %p3964_p8 }
  0x69   : > { %p3972_p3 = pnand %p3971_p5, %p3965_p11 }
  0x6b   : > { %3975 = shalt.err (!%p3972_p3)
}
  0x6c   : > { %s5004_s4 = sld [smem:[#allocation29_spill]]  ;;  %s4142_s23 = smov [#allocation14]  }
  0x6d   : > { %s382_s28 = sshll.u32 %s4142_s23, 4  ;;  %s3172_s16 = sshll.u32 %s4319_s17, 3  ;;  %s383_s28 = int_to_ptr.vmem [resolvable:$true] %s382_s28 }
  0x6e   : > { %s3987_s1 = scalar_lea.vmem %s383_s28, 1024  ;;  %p5005_p2 = pmov %p5003_p6 }
  0x6f   : > { %p3988_p7 = scmp.ne.s32.totalorder %s383_s28, %s3987_s1  ;;  %p3995_p6 = scmp.lt.s32.totalorder %s383_s28, %s383_s28 }
  0x70   : > { %p3996_p8 = scmp.lt.s32.totalorder %s3987_s1, %s3987_s1 }
  0x71   : > { %p3990_p0 = pnand %p3988_p7, %p5005_p2 }
  0x72   : > { %3681 = dma.hbm_to_vmem [thread:$0]  (!%p5002_p4), %s5004_s4, 1024, %s357_s5, [#allocation10], %s5000_s30, %s5000_s30, %s4999_s18  }
  0x73   : > { %p3991_p1 = pneg %p3990_p0  ;;  %p3997_p11 = por %p3996_p8, %p3995_p6 }
  0x75   : > { %p3998_p12 = pnand %p3997_p11, %p3991_p1 }
  0x77   : > { %4001 = shalt.err (!%p3998_p12)
}
  0x78   : > { %3687 = dma.hbm_to_vmem [thread:$0]  (!%p5002_p4), %s4949_s6, 1024, %s383_s28, [#allocation13], %s5000_s30, %s5000_s30, %s4999_s18  }
  0x79   : > { %s3271_s13 = sshll.u32 %s4134_s24, 7  ;;  %s415_s14 = scalar_lea.vmem [#allocation3], %s3172_s16 }
  0x7a   : > { %s4405_s1 = scalar_lea.hbm %s4943_s0, %s3271_s13  ;;  %s422_s4 = sshll.u32 %s415_s14, 4  ;;  %s4407_s4 = int_to_ptr.vmem [resolvable:$true] %s422_s4 }
  0x7b   : > { %s412_s11 = scalar_lea.sflag [#allocation4], %s4319_s17  ;;  %s4002_s10 = scalar_lea.hbm %s4405_s1, 128 }
  0x7c   : > { %p4003_p10 = scmp.ne.s32.totalorder %s4405_s1, %s4002_s10  ;;  %s4007_s20 = scalar_lea.hbm %s4943_s0, 256 }
  0x7d   : > { %p4008_p4 = scmp.lt.s32.totalorder %s4405_s1, %s4943_s0  ;;  %p4009_p7 = scmp.lt.s32.totalorder %s4007_s20, %s4002_s10 }
  0x7e   : > { %p4005_p5 = pnand %p4003_p10, %p4348_p13 }
  0x7f   : > { %p4010_p2 = por %p4009_p7, %p4008_p4 }
  0x80   : > { %p4006_p3 = pneg %p4005_p5 }
  0x82   : > { %p4011_p0 = pnand %p4010_p2, %p4006_p3 }
  0x84   : > { %4014 = shalt.err (!%p4011_p0)
}
  0x85   : > { %s4015_s17 = scalar_lea.vmem %s4407_s4, 128  ;;  %s4143_s16 = smov [#allocation3]  }
  0x86   : > { %p4016_p1 = scmp.ne.s32.totalorder %s4407_s4, %s4015_s17  ;;  %s4020_s23 = sshll.u32 %s4143_s16, 4  ;;  %s4021_s23 = int_to_ptr.vmem [resolvable:$false] %s4020_s23 }
  0x87   : > { %s4022_s14 = scalar_lea.vmem %s4021_s23, 256  ;;  %p4023_p11 = scmp.lt.s32.totalorder %s4407_s4, %s4021_s23 }
  0x88   : > { %p4018_p6 = pnand %p4016_p1, %p4348_p13  ;;  %p4024_p12 = scmp.lt.s32.totalorder %s4022_s14, %s4015_s17 }
  0x8a   : > { %p4019_p8 = pneg %p4018_p6  ;;  %p4025_p10 = por %p4024_p12, %p4023_p11 }
  0x8c   : > { %p4026_p5 = pnand %p4025_p10, %p4019_p8 }
  0x8e   : > { %4029 = shalt.err (!%p4026_p5)
}
  0x8f   : > { %3691 = dma.hbm_to_vmem [thread:$0]  (!%p4323_p9), %s4405_s1, 128, %s4407_s4, %s412_s11, %s5000_s30, %s5000_s30, %s4999_s18  }
  0x90   : > { %s4030_s10 = scalar_lea.hbm %s4340_s21, 256  ;;  %s4035_s20 = scalar_lea.hbm %s4945_s2, 512 }
  0x91   : > { %p4031_p3 = scmp.ne.s32.totalorder %s4340_s21, %s4030_s10  ;;  %p4036_p2 = scmp.lt.s32.totalorder %s4340_s21, %s4945_s2 }
  0x92   : > { %p4037_p0 = scmp.lt.s32.totalorder %s4035_s20, %s4030_s10 }
  0x93   : > { %p4033_p4 = pnand %p4031_p3, %p4348_p13 }
  0x94   : > { %p4038_p1 = por %p4037_p0, %p4036_p2 }
  0x95   : > { %p4034_p7 = pneg %p4033_p4 }
  0x97   : > { %p4039_p6 = pnand %p4038_p1, %p4034_p7 }
  0x99   : > { %4042 = shalt.err (!%p4039_p6)
}
  0x9a   : > { %s4043_s4 = scalar_lea.vmem %s4376_s26, 256  ;;  %s4144_s11 = smov [#allocation8]  }
  0x9b   : > { %p4044_p8 = scmp.ne.s32.totalorder %s4376_s26, %s4043_s4  ;;  %s4048_s1 = sshll.u32 %s4144_s11, 4  ;;  %s4049_s1 = int_to_ptr.vmem [resolvable:$false] %s4048_s1 }
  0x9c   : > { %s4050_s17 = scalar_lea.vmem %s4049_s1, 512  ;;  %p4051_p10 = scmp.lt.s32.totalorder %s4376_s26, %s4049_s1 }
  0x9d   : > { %p4046_p11 = pnand %p4044_p8, %p4348_p13  ;;  %p4052_p5 = scmp.lt.s32.totalorder %s4050_s17, %s4043_s4 }
  0x9f   : > { %p4047_p12 = pneg %p4046_p11  ;;  %p4053_p3 = por %p4052_p5, %p4051_p10 }
  0xa1   : > { %p4054_p4 = pnand %p4053_p3, %p4047_p12 }
  0xa3   : > { %4057 = shalt.err (!%p4054_p4)
}
  0xa4   : > { %3697 = dma.hbm_to_vmem [thread:$0]  (!%p4323_p9), %s4340_s21, 256, %s4376_s26, %s4342_s12, %s5000_s30, %s5000_s30, %s4999_s18  }
  0xa5   : > { %p5006_p13 = scmp.ne.s32.totalorder %s4988_s29, 0 }
  0xa6   : > { %s4460_s3 = sand.u32 (!%p5006_p13), 1, %s4126_s22   ;;  %p5007_p7 = scmp.ne.s32.totalorder (!%p5006_p13), %s4985_s27, 0 }
  0xa7   : > { %478 = sbr.rel (%p5006_p13) target bundleno = 5445 (0x1545), region = 68  ;;  %s3184_s16 = sshll.u32 (!%p5006_p13), %s4460_s3, 3 }
  0xa8   : > { %s481_s23 = scalar_lea.sflag (!%p5006_p13), [#allocation4], %s4460_s3  ;;  %s4464_s14 = scalar_lea.vmem (!%p5006_p13), [#allocation3], %s3184_s16 }
  0xac   : > { %4101 = dma.done.wait (%p5007_p7), %s481_s23, 128  }
  0xad   : > { %4103 = vsyncadd (%p5007_p7), %s481_s23, 4294967168  ;;  %s489_s12 = sand.u32 1, %s4243_s25   ;;  %s4472_s21 = sshll.u32 %s4460_s3, 4 }
  0xae   : > { %s490_s29 = scalar_lea.sflag [#allocation7], %s489_s12  ;;  %s493_s19 = scalar_lea.vmem [#allocation6], %s4472_s21 }
  0xaf   : > { %4105 = dma.done.wait (%p5007_p7), %s490_s29, 512  }
  0xb0   : > { %4107 = vsyncadd (%p5007_p7), %s490_s29, 4294966784  ;;  %s502_s18 = scalar_lea.vmem [#allocation8], %s4472_s21  ;;  %p5008_p9 = scmp.eq.s32.totalorder %s4243_s25, 0 }
  0xb2   : > { %4109 = dma.done.wait (%p5008_p9), [#allocation10], 2048   ;;  %p5009_p2 = pmov %p5008_p9 }
  0xb4   : > { %4111 = vsyncadd (%p5009_p2), [#allocation10], 4294965248  ;;  %p5010_p0 = pmov %p5009_p2 }
  0xb6   : > { %4113 = dma.done.wait (%p5010_p0), [#allocation13], 2048   ;;  %p5011_p1 = pmov %p5010_p0 }
  0xb7   : > { %v4145_v0 = vmov 0.0   ;;  %vm4146_vm0 = vmmov 0   ;;  %v3761_v1 = vld [vmem:[#allocation11 + $0x38] sm:$0xff]   ;;  %v3762_v2 = vld [vmem:[#allocation11 + $0x30] sm:$0xff]   ;;  %v3763_v4 = vld [vmem:[#allocation11 + $0x28] sm:$0xff]   ;;  %vm951_vm1 = vcmask 130048  }
  0xb8   : > { %4115 = vsyncadd (%p5011_p1), [#allocation13], 4294965248  ;;  %3379 = vmatprep.subr.bf16.mxu0 %v4145_v0  ;;  %3395 = vmatprep.mubr.msk.bf16.mxu0 %vm4146_vm0, %v4145_v0  ;;  %v3764_v3 = vld [vmem:[#allocation9 + $0x38] sm:$0xff]   ;;  %v3766_v5 = vld [vmem:[#allocation9 + $0x30] sm:$0xff]   ;;  %s4147_s27 = smov 112   ;;  %s4148_s30 = smov 96  }
  0xb9   : > { %3399 = vmatprep.subr.bf16.mxu1 %v3761_v1  ;;  %3380 = vmatpush3.bf16.msra.mxu0 %v3764_v3  ;;  %v3765_v6 = vld [vmem:[#allocation11 + $0x20] sm:$0xff]   ;;  %v3768_v7 = vld [vmem:[#allocation9 + $0x28] sm:$0xff]   ;;  %v3767_v8 = vld [vmem:[#allocation11 + $0x18] sm:$0xff]   ;;  %s4149_s26 = smov 80   ;;  %s4150_s10 = smov 64   ;;  %vm1394_vm2 = vcmask 261248  }
  0xba   : > { %3400 = vmatpush3.bf16.msra.mxu1 %v3761_v1  ;;  %3381 = vmatprep.subr.bf16.mxu0 %v4145_v0  ;;  %v3770_v9 = vld [vmem:[#allocation9 + $0x20] sm:$0xff]   ;;  %v3769_v11 = vld [vmem:[#allocation11 + $0x10] sm:$0xff]   ;;  %v3772_v12 = vld [vmem:[#allocation9 + $0x18] sm:$0xff]   ;;  %s4151_s28 = smov 48   ;;  %s4152_s5 = smov 32   ;;  %vm1625_vm3 = vcmask 392448  }
  0xbb   : > { %3401 = vmatprep.subr.bf16.mxu1 %v3762_v2  ;;  %v3775_v10 = vld [vmem:[%s493_s19] sm:$0xff]   ;;  %v3771_v13 = vld [vmem:[#allocation11 + $0x8] sm:$0xff]   ;;  %v3779_v19 = vld [vmem:[%s4464_s14] sm:$0xff]   ;;  %s4153_s20 = smov 16   ;;  %vm1856_vm4 = vcmask 523648   ;;  %vm2087_vm5 = vcmask 654848  }
  0xbc   : > { %3415 = vmatprep.mubr.bf16.mxu1 %v3775_v10  ;;  %v3774_v14 = vld [vmem:[#allocation9 + $0x10] sm:$0xff]   ;;  %v3773_v15 = vld [vmem:[#allocation11] sm:$0xff]   ;;  %v3777_v16 = vld [vmem:[#allocation9 + $0x8] sm:$0xff]   ;;  %vm2318_vm6 = vcmask 786048   ;;  %vm2549_vm7 = vcmask 917248   ;;  %vm2780_vm8 = vcmask 1048448  }
  0xbd   : > { %3382 = vmatpush3.bf16.msra.mxu0 %v3766_v5  ;;  %v3778_v17 = vld [vmem:[#allocation9] sm:$0xff]   ;;  %v3776_v18 = vld [vmem:[%s493_s19 + $0x8] sm:$0xff]   ;;  %v3781_v35 = vld [vmem:[#allocation12 + $0x30] sm:$0xff]   ;;  %s5012_s14 = sld [smem:[#allocation31_spill]]  ;;  %s2998_s15 = scalar_lea.sflag [#allocation5], %s4460_s3 }
  0xbe   : > { %3402 = vmatpush3.bf16.msra.mxu1 %v3762_v2  ;;  %3383 = vmatprep.subr.bf16.mxu0 %v4145_v0  ;;  %v3780_v34 = vld [vmem:[#allocation12 + $0x38] sm:$0xff]   ;;  %v3788_v36 = vld [vmem:[%s502_s18] sm:$0xff]   ;;  %v3782_v37 = vld [vmem:[#allocation12 + $0x28] sm:$0xff]   ;;  %s5013_s19 = sld [smem:[#allocation32_spill]] }
  0xbf   : > { %3403 = vmatprep.subr.bf16.mxu1 %v3763_v4  ;;  %v3783_v38 = vld [vmem:[#allocation12 + $0x20] sm:$0xff]   ;;  %v3784_v39 = vld [vmem:[#allocation12 + $0x18] sm:$0xff]   ;;  %v3785_v40 = vld [vmem:[#allocation12 + $0x10] sm:$0xff]  }
  0xc0   : > { %v3786_v41 = vld [vmem:[#allocation12 + $0x8] sm:$0xff]   ;;  %v3787_v42 = vld [vmem:[#allocation12] sm:$0xff]  }
  0xc1   : > { %3384 = vmatpush3.bf16.msra.mxu0 %v3768_v7  ;;  %v3789_v43 = vld [vmem:[%s502_s18 + $0x8] sm:$0xff]   ;;  %s5014_s18 = sld [smem:[#allocation25_spill]] }
  0xc2   : > { %3404 = vmatpush3.bf16.msra.mxu1 %v3763_v4  ;;  %3385 = vmatprep.subr.bf16.mxu0 %v4145_v0 }
  0xc3   : > { %3405 = vmatprep.subr.bf16.mxu1 %v3765_v6 }
  0xc5   : > { %3386 = vmatpush3.bf16.msra.mxu0 %v3770_v9 }
  0xc6   : > { %3406 = vmatpush3.bf16.msra.mxu1 %v3765_v6  ;;  %3387 = vmatprep.subr.bf16.mxu0 %v4145_v0 }
  0xc7   : > { %3407 = vmatprep.subr.bf16.mxu1 %v3767_v8  ;;  %p5016_p8 = scmp.ne.s32.totalorder %s5014_s18, 0 }
  0xc9   : > { %3388 = vmatpush3.bf16.msra.mxu0 %v3772_v12 }
  0xca   : > { %3408 = vmatpush3.bf16.msra.mxu1 %v3767_v8  ;;  %3389 = vmatprep.subr.bf16.mxu0 %v4145_v0 }
  0xcb   : > { %3409 = vmatprep.subr.bf16.mxu1 %v3769_v11 }
  0xcd   : > { %3390 = vmatpush3.bf16.msra.mxu0 %v3774_v14 }
  0xce   : > { %3410 = vmatpush3.bf16.msra.mxu1 %v3769_v11  ;;  %3391 = vmatprep.subr.bf16.mxu0 %v4145_v0 }
  0xcf   : > { %3411 = vmatprep.subr.bf16.mxu1 %v3771_v13 }
  0xd1   : > { %3392 = vmatpush3.bf16.msra.mxu0 %v3777_v16 }
  0xd2   : > { %3412 = vmatpush3.bf16.msra.mxu1 %v3771_v13  ;;  %3393 = vmatprep.subr.bf16.mxu0 %v4145_v0 }
  0xd3   : > { %3413 = vmatprep.subr.bf16.mxu1 %v3773_v15 }
  0xd5   : > { %3394 = vmatpush3.bf16.msra.mxu0 %v3778_v17 }
  0xd6   : > { %3414 = vmatpush3.bf16.msra.mxu1 %v3773_v15  ;;  %3419 = vmatprep.subr.bf16.mxu0 %v3780_v34 }
  0xd7   : > { %3439 = vmatprep.subr.bf16.mxu1 %v4145_v0 }
  0xd8   : > { %3396 = vmatmul.mubr.bf16.vlgmr.msra.gmra.mxu0 %v3779_v19 }
  0xd9   : > { %3416 = vmatmul.mubr.bf16.vlgmr.msra.gmra.mxu1 %v3776_v18  ;;  %3420 = vmatpush3.bf16.msra.mxu0 %v3780_v34 }
  0xda   : > { %3441 = vmatprep.mubr.msk.bf16.mxu1 %vm4146_vm0, %v4145_v0  ;;  %3421 = vmatprep.subr.bf16.mxu0 %v3781_v35 }
  0xdb   : > { %3435 = vmatprep.mubr.bf16.mxu0 %v3788_v36 }
  0xdd   : > { %3422 = vmatpush3.bf16.msra.mxu0 %v3781_v35 }
  0xde   : > { %3423 = vmatprep.subr.bf16.mxu0 %v3782_v37 }
  0xe1   : > { %3424 = vmatpush3.bf16.msra.mxu0 %v3782_v37 }
  0xe2   : > { %3425 = vmatprep.subr.bf16.mxu0 %v3783_v38 }
  0xe5   : > { %3426 = vmatpush3.bf16.msra.mxu0 %v3783_v38 }
  0xe6   : > { %3427 = vmatprep.subr.bf16.mxu0 %v3784_v39 }
  0xe9   : > { %3428 = vmatpush3.bf16.msra.mxu0 %v3784_v39 }
  0xea   : > { %3429 = vmatprep.subr.bf16.mxu0 %v3785_v40 }
  0xed   : > { %3430 = vmatpush3.bf16.msra.mxu0 %v3785_v40 }
  0xee   : > { %3431 = vmatprep.subr.bf16.mxu0 %v3786_v41 }
  0xf1   : > { %3432 = vmatpush3.bf16.msra.mxu0 %v3786_v41 }
  0xf2   : > { %3433 = vmatprep.subr.bf16.mxu0 %v3787_v42 }
  0xf5   : > { %3434 = vmatpush3.bf16.msra.mxu0 %v3787_v42 }
  0xf6   : > { %3487 = vmatprep.subr.bf16.mxu0 %v4145_v0 }
  0xf8   : > { %3436 = vmatmul.mubr.bf16.vlgmr.msra.gmra.mxu0 %v3789_v43 }
  0xf9   : > { %3489 = vmatprep.mubr.msk.bf16.mxu0 %vm4146_vm0, %v4145_v0 }
 0x198   : > { %v4506_v22 = vpop.f32.mrf.mxu0 }
 0x199   : > { %v3417_v20 = vpop.f32.mrf.mxu1  ;;  %v4519_v31 = vpack.c.bf16 %v4506_v22, %v4506_v22 }
 0x19a   : > { %v3397_v24 = vpop.f32.mrf.mxu0 }
 0x19b   : > { %v805_v21 = vpop.f32.mrf.mxu1 }
 0x19c   : > { %v4508_v26 = vpop.f32.mrf.mxu0 }
 0x19d   : > { %v3418_v23 = vpop.f32.mrf.mxu1  ;;  %v4530_v33 = vpack.c.bf16 %v4508_v26, %v4508_v26 }
 0x19e   : > { %v3398_v28 = vpop.f32.mrf.mxu0  ;;  %v4515_v30 = vpack.c.bf16 %v3418_v23, %v3417_v20 }
 0x19f   : > { %v808_v25 = vpop.f32.mrf.mxu1 }
 0x1a0   : > { %v4510_v27 = vpack.c.bf16 %v808_v25, %v805_v21  ;;  %v1002_v32 = vsel %vm951_vm1, %v4515_v30, 0 }
 0x1a2   : > { %v956_v29 = vsel %vm951_vm1, %v4510_v27, 0 }
 0x1a3   : > { %3440 = vmatpush3.bf16.xpose.msra.mxu1 %v956_v29 }
 0x1a4   : > { %3445 = vmatprep.subr.bf16.mxu1 %v4145_v0 }
 0x1aa   : > { %3442 = vmatmul.mubr.msk.bf16.vlgmr.msra.gmra.mxu1 %vm951_vm1, %v4519_v31 }
 0x1ab   : > { %3446 = vmatpush3.bf16.xpose.msra.mxu1 %v1002_v32  ;;  %3447 = vmatprep.mubr.msk.bf16.mxu1 %vm4146_vm0, %v4145_v0 }
 0x1ac   : > { %3451 = vmatprep.subr.bf16.mxu1 %v4145_v0 }
 0x1b2   : > { %3448 = vmatmul.mubr.msk.bf16.vlgmr.msra.gmra.mxu1 %vm951_vm1, %v4530_v33 }
 0x1b3   : > { %3453 = vmatprep.mubr.msk.bf16.mxu1 %vm4146_vm0, %v4145_v0 }
 0x1b8   : > { %v3437_v2 = vpop.f32.mrf.mxu0 }
 0x1ba   : > { %v930_v4 = vpop.f32.mrf.mxu0 }
 0x1bc   : > { %v3438_v5 = vpop.f32.mrf.mxu0 }
 0x1bd   : > { %v4549_v6 = vpack.c.bf16 %v3438_v5, %v3437_v2 }
 0x1be   : > { %v933_v7 = vpop.f32.mrf.mxu0 }
 0x1bf   : > { %v4551_v8 = vpack.c.bf16 %v933_v7, %v930_v4 }
 0x1c1   : > { %3452 = vmatpush3.bf16.msra.mxu1 %v4551_v8 }
 0x1c2   : > { %3457 = vmatprep.subr.bf16.mxu1 %v4145_v0 }
 0x26a   : > { %v992_v44 = vpop.f32.mrf.mxu1 }
 0x26b   : > { %v1044_v45 = vmul.f32 0.088388346, %v992_v44 }
 0x26c   : > { %v3443_v46 = vpop.f32.mrf.mxu1 }
 0x26d   : > { %v1046_v47 = vsel %vm951_vm1, %v1044_v45, -inf }
 0x26e   : > { %1047 = vmax.xlane.f32.xlu0 %v1046_v47  ;;  %v995_v48 = vpop.f32.mrf.mxu1 }
 0x270   : > { %v3444_v49 = vpop.f32.mrf.mxu1 }
 0x272   : > { %v1038_v50 = vpop.f32.mrf.mxu1 }
 0x273   : > { %v1045_v51 = vmul.f32 0.088388346, %v1038_v50 }
 0x274   : > { %v3449_v52 = vpop.f32.mrf.mxu1 }
 0x275   : > { %v1049_v53 = vsel %vm951_vm1, %v1045_v51, -inf }
 0x276   : > { %1050 = vmax.xlane.f32.xlu0 %v1049_v53  ;;  %v1041_v54 = vpop.f32.mrf.mxu1 }
 0x278   : > { %v3450_v55 = vpop.f32.mrf.mxu1 }
 0x28c   : > { %1164 = vrot.lane.b32.xlu0 %v4510_v27, %s4147_s27 }
 0x2f7   : > { %v1048_v56 = vpop.xlane.xlu0 %1047 }
 0x2f8   : > { %v1052_v57 = vsub.f32 %v1044_v45, %v1048_v56 }
 0x2fa   : > { %v1054_v58 = vmul.f32 1.442695, %v1052_v57 }
 0x2fc   : > { %3798 = vpow2.f32 %v1054_v58 }
 0x2ff   : > { %v1051_v59 = vpop.xlane.xlu0 %1050 }
 0x300   : > { %v1053_v60 = vsub.f32 %v1045_v51, %v1051_v59 }
 0x302   : > { %v1056_v61 = vmul.f32 1.442695, %v1053_v60 }
 0x303   : > { %v1165_v16 = vpop.permute.xlu0 %1164 }
 0x304   : > { %3800 = vpow2.f32 %v1056_v61  ;;  %v1170_v19 = vsel %vm951_vm1, %v1165_v16, 0 }
 0x309   : > { %v3799_v62 = vpop.eup %3798 }
 0x30a   : > { %v1058_v63 = vsel %vm951_vm1, %v3799_v62, 0.0 }
 0x30b   : > { %1059 = vadd.xlane.f32.xlu1 %v1058_v63 }
 0x311   : > { %v3801_v1 = vpop.eup %3800 }
 0x312   : > { %v1061_v3 = vsel %vm951_vm1, %v3801_v1, 0.0 }
 0x313   : > { %1062 = vadd.xlane.f32.xlu1 %v1061_v3 }
 0x324   : > { %1161 = vrot.lane.b32.xlu1 %v4519_v31, %s4147_s27 }
 0x328   : > { %1216 = vrot.lane.b32.xlu1 %v4515_v30, %s4147_s27 }
 0x32c   : > { %1213 = vrot.lane.b32.xlu1 %v4530_v33, %s4147_s27 }
 0x394   : > { %v1060_v9 = vpop.xlane.xlu1 %1059 }
 0x395   : > { %3802 = vrcp.f32 %v1060_v9 }
 0x39c   : > { %v1063_v10 = vpop.xlane.xlu1 %1062 }
 0x39d   : > { %3804 = vrcp.f32 %v1063_v10 }
 0x3a0   : > { %v1162_v18 = vpop.permute.xlu1 %1161 }
 0x3a2   : > { %v3803_v11 = vpop.eup %3802 }
 0x3a3   : > { %v1066_v12 = vmul.f32 %v3803_v11, %v3799_v62 }
 0x3a4   : > { %v1217_v20 = vpop.permute.xlu1 %1216 }
 0x3a5   : > { %v1068_v13 = vpack.c.bf16 %v1066_v12, %v1066_v12  ;;  %v1222_v21 = vsel %vm951_vm1, %v1217_v20, 0 }
 0x3a7   : > { %3454 = vmatmul.mubr.msk.bf16.vlgmr.msra.gmra.mxu1 %vm951_vm1, %v1068_v13 }
 0x3a8   : > { %3458 = vmatpush3.bf16.msra.mxu1 %v4549_v6  ;;  %3459 = vmatprep.mubr.msk.bf16.mxu1 %vm4146_vm0, %v4145_v0  ;;  %v1214_v23 = vpop.permute.xlu1 %1213 }
 0x3a9   : > { %3463 = vmatprep.subr.bf16.mxu1 %v4145_v0 }
 0x3aa   : > { %v3805_v14 = vpop.eup %3804 }
 0x3ab   : > { %v1067_v15 = vmul.f32 %v3805_v14, %v3801_v1 }
 0x3ad   : > { %v1069_v17 = vpack.c.bf16 %v1067_v15, %v1067_v15 }
 0x3af   : > { %3460 = vmatmul.mubr.msk.bf16.vlgmr.msra.gmra.mxu1 %vm951_vm1, %v1069_v17 }
 0x3b0   : > { %3464 = vmatpush3.bf16.xpose.msra.mxu1 %v1170_v19  ;;  %3465 = vmatprep.mubr.msk.bf16.mxu1 %vm4146_vm0, %v4145_v0 }
 0x3b1   : > { %3469 = vmatprep.subr.bf16.mxu1 %v4145_v0 }
 0x3b7   : > { %3466 = vmatmul.mubr.msk.bf16.vlgmr.msra.gmra.mxu1 %vm951_vm1, %v1162_v18 }
 0x3b8   : > { %3470 = vmatpush3.bf16.xpose.msra.mxu1 %v1222_v21  ;;  %3471 = vmatprep.mubr.msk.bf16.mxu1 %vm4146_vm0, %v4145_v0 }
 0x3b9   : > { %3475 = vmatprep.subr.bf16.mxu1 %v4145_v0 }
 0x3bf   : > { %3472 = vmatmul.mubr.msk.bf16.vlgmr.msra.gmra.mxu1 %vm951_vm1, %v1214_v23 }
 0x3c0   : > { %3477 = vmatprep.mubr.msk.bf16.mxu1 %vm4146_vm0, %v4145_v0 }
 0x467   : > { %v1107_v24 = vpop.f32.mrf.mxu1 }
 0x468   : > { %v1156_v25 = vadd.f32 %v1107_v24, %v4506_v22 }
 0x469   : > { %v3455_v28 = vpop.f32.mrf.mxu1 }
 0x46a   : > { %1158 = vst.msk [vmem:[#allocation2] sm:$0xff] %vm951_vm1, %v1156_v25 }
 0x46b   : > { %v1110_v29 = vpop.f32.mrf.mxu1 }
 0x46d   : > { %v3456_v32 = vpop.f32.mrf.mxu1 }
 0x46f   : > { %v1150_v34 = vpop.f32.mrf.mxu1 }
 0x470   : > { %v1157_v35 = vadd.f32 %v1150_v34, %v4508_v26 }
 0x471   : > { %v3461_v36 = vpop.f32.mrf.mxu1 }
 0x472   : > { %1159 = vst.msk [vmem:[#allocation2 + $0x8] sm:$0xff] %vm951_vm1, %v1157_v35 }
 0x473   : > { %v1153_v37 = vpop.f32.mrf.mxu1 }
 0x475   : > { %v3462_v38 = vpop.f32.mrf.mxu1 }
 0x477   : > { %v1206_v39 = vpop.f32.mrf.mxu1 }
 0x478   : > { %v1264_v40 = vmul.f32 0.088388346, %v1206_v39 }
 0x479   : > { %v3467_v41 = vpop.f32.mrf.mxu1 }
 0x47a   : > { %v1266_v42 = vsel %vm951_vm1, %v1264_v40, -inf }
 0x47b   : > { %1267 = vmax.xlane.f32.xlu0 %v1266_v42  ;;  %v1209_v43 = vpop.f32.mrf.mxu1 }
 0x47d   : > { %v3468_v44 = vpop.f32.mrf.mxu1 }
 0x47f   : > { %v1258_v45 = vpop.f32.mrf.mxu1 }
 0x480   : > { %v1265_v46 = vmul.f32 0.088388346, %v1258_v45 }
 0x481   : > { %v3473_v47 = vpop.f32.mrf.mxu1 }
 0x482   : > { %v1269_v48 = vsel %vm951_vm1, %v1265_v46, -inf }
 0x483   : > { %1270 = vmax.xlane.f32.xlu1 %v1269_v48  ;;  %v1261_v49 = vpop.f32.mrf.mxu1 }
 0x485   : > { %v3474_v50 = vpop.f32.mrf.mxu1 }
 0x494   : > { %1338 = vrot.lane.b32.xlu1 %v4549_v6, %s4147_s27 }
 0x498   : > { %1399 = vrot.lane.b32.xlu1 %v4510_v27, %s4148_s30 }
 0x49c   : > { %1449 = vrot.lane.b32.xlu1 %v4515_v30, %s4148_s30 }
 0x4a0   : > { %1447 = vrot.lane.b32.xlu1 %v4530_v33, %s4148_s30 }
 0x504   : > { %v1268_v51 = vpop.xlane.xlu0 %1267 }
 0x505   : > { %v1272_v52 = vsub.f32 %v1264_v40, %v1268_v51 }
 0x507   : > { %v1274_v53 = vmul.f32 1.442695, %v1272_v52 }
 0x509   : > { %3806 = vpow2.f32 %v1274_v53 }
 0x50c   : > { %v1271_v54 = vpop.xlane.xlu1 %1270 }
 0x50d   : > { %v1273_v55 = vsub.f32 %v1265_v46, %v1271_v54 }
 0x50f   : > { %v1276_v56 = vmul.f32 1.442695, %v1273_v55 }
 0x510   : > { %v1339_v57 = vpop.permute.xlu1 %1338 }
 0x511   : > { %3808 = vpow2.f32 %v1276_v56 }
 0x514   : > { %v1400_v58 = vpop.permute.xlu1 %1399 }
 0x515   : > { %v1405_v59 = vsel %vm951_vm1, %v1400_v58, 0 }
 0x516   : > { %v3807_v60 = vpop.eup %3806  ;;  %3488 = vmatpush3.bf16.xpose.msra.mxu0 %v1405_v59 }
 0x517   : > { %v1278_v61 = vsel %vm951_vm1, %v3807_v60, 0.0  ;;  %3499 = vmatprep.subr.bf16.mxu0 %v4145_v0 }
 0x518   : > { %1279 = vadd.xlane.f32.xlu0 %v1278_v61  ;;  %v1450_v12 = vpop.permute.xlu1 %1449 }
 0x519   : > { %v1455_v14 = vsel %vm951_vm1, %v1450_v12, 0 }
 0x51c   : > { %v1448_v15 = vpop.permute.xlu1 %1447 }
 0x51e   : > { %v3809_v62 = vpop.eup %3808 }
 0x51f   : > { %v1281_v63 = vsel %vm951_vm1, %v3809_v62, 0.0 }
 0x520   : > { %1282 = vadd.xlane.f32.xlu0 %v1281_v63 }
 0x536   : > { %1291 = vrot.lane.b32.xlu0 %v4551_v8, %s4147_s27 }
 0x53a   : > { %1397 = vrot.lane.b32.xlu0 %v4519_v31, %s4148_s30 }
 0x5a1   : > { %v1280_v1 = vpop.xlane.xlu0 %1279 }
 0x5a2   : > { %3810 = vrcp.f32 %v1280_v1 }
 0x5a9   : > { %v1283_v2 = vpop.xlane.xlu0 %1282 }
 0x5aa   : > { %3812 = vrcp.f32 %v1283_v2 }
 0x5ad   : > { %v1292_v3 = vpop.permute.xlu0 %1291 }
 0x5ae   : > { %3476 = vmatpush3.bf16.msra.mxu1 %v1292_v3 }
 0x5af   : > { %v3811_v4 = vpop.eup %3810  ;;  %3481 = vmatprep.subr.bf16.mxu1 %v4145_v0 }
 0x5b0   : > { %v1286_v5 = vmul.f32 %v3811_v4, %v3807_v60 }
 0x5b1   : > { %v1398_v7 = vpop.permute.xlu0 %1397 }
 0x5b2   : > { %3490 = vmatmul.mubr.msk.bf16.vlgmr.msra.gmra.mxu0 %vm951_vm1, %v1398_v7  ;;  %v1288_v9 = vpack.c.bf16 %v1286_v5, %v1286_v5 }
 0x5b3   : > { %3501 = vmatprep.mubr.msk.bf16.mxu0 %vm4146_vm0, %v4145_v0 }
 0x5b4   : > { %3478 = vmatmul.mubr.msk.bf16.vlgmr.msra.gmra.mxu1 %vm951_vm1, %v1288_v9 }
 0x5b5   : > { %3482 = vmatpush3.bf16.msra.mxu1 %v1339_v57  ;;  %3483 = vmatprep.mubr.msk.bf16.mxu1 %vm4146_vm0, %v4145_v0 }
 0x5b6   : > { %3493 = vmatprep.subr.bf16.mxu1 %v4145_v0 }
 0x5b7   : > { %v3813_v10 = vpop.eup %3812 }
 0x5b8   : > { %v1287_v11 = vmul.f32 %v3813_v10, %v3809_v62 }
 0x5ba   : > { %v1289_v13 = vpack.c.bf16 %v1287_v11, %v1287_v11 }
 0x5bc   : > { %3484 = vmatmul.mubr.msk.bf16.vlgmr.msra.gmra.mxu1 %vm951_vm1, %v1289_v13 }
 0x5bd   : > { %3494 = vmatpush3.bf16.xpose.msra.mxu1 %v1455_v14  ;;  %3495 = vmatprep.mubr.msk.bf16.mxu1 %vm4146_vm0, %v4145_v0 }
 0x5be   : > { %3505 = vmatprep.subr.bf16.mxu1 %v4145_v0 }
 0x5c4   : > { %3496 = vmatmul.mubr.msk.bf16.vlgmr.msra.gmra.mxu1 %vm951_vm1, %v1448_v15 }
 0x5c5   : > { %3507 = vmatprep.mubr.msk.bf16.mxu1 %vm4146_vm0, %v4145_v0 }
 0x672   : > { %v1441_v16 = vpop.f32.mrf.mxu0 }
 0x673   : > { %v1497_v17 = vmul.f32 0.088388346, %v1441_v16 }
 0x674   : > { %v4617_v18 = vpop.f32.mrf.mxu1  ;;  %v3491_v19 = vpop.f32.mrf.mxu0 }
 0x675   : > { %v1499_v20 = vsel %vm951_vm1, %v1497_v17, -inf }
 0x676   : > { %1500 = vmax.xlane.f32.xlu0 %v1499_v20  ;;  %v3479_v21 = vpop.f32.mrf.mxu1  ;;  %v1444_v23 = vpop.f32.mrf.mxu0 }
 0x678   : > { %v1334_v24 = vpop.f32.mrf.mxu1  ;;  %v3492_v25 = vpop.f32.mrf.mxu0 }
 0x67a   : > { %v3480_v28 = vpop.f32.mrf.mxu1 }
 0x67c   : > { %v4620_v29 = vpop.f32.mrf.mxu1 }
 0x67e   : > { %v3485_v32 = vpop.f32.mrf.mxu1 }
 0x680   : > { %v1381_v34 = vpop.f32.mrf.mxu1 }
 0x682   : > { %v3486_v35 = vpop.f32.mrf.mxu1 }
 0x684   : > { %v1491_v36 = vpop.f32.mrf.mxu1 }
 0x685   : > { %v1498_v37 = vmul.f32 0.088388346, %v1491_v36 }
 0x686   : > { %v3497_v38 = vpop.f32.mrf.mxu1 }
 0x687   : > { %v1502_v39 = vsel %vm951_vm1, %v1498_v37, -inf }
 0x688   : > { %1503 = vmax.xlane.f32.xlu1 %v1502_v39  ;;  %v1494_v40 = vpop.f32.mrf.mxu1 }
 0x68a   : > { %v3498_v41 = vpop.f32.mrf.mxu1 }
 0x699   : > { %1569 = vrot.lane.b32.xlu1 %v4549_v6, %s4148_s30 }
 0x69d   : > { %1630 = vrot.lane.b32.xlu1 %v4510_v27, %s4149_s26 }
 0x6a1   : > { %1680 = vrot.lane.b32.xlu1 %v4515_v30, %s4149_s26 }
 0x6a5   : > { %1678 = vrot.lane.b32.xlu1 %v4530_v33, %s4149_s26 }
 0x6ff   : > { %v1501_v42 = vpop.xlane.xlu0 %1500 }
 0x700   : > { %v1505_v43 = vsub.f32 %v1497_v17, %v1501_v42 }
 0x702   : > { %v1507_v44 = vmul.f32 1.442695, %v1505_v43 }
 0x704   : > { %3814 = vpow2.f32 %v1507_v44 }
 0x711   : > { %v3815_v45 = vpop.eup %3814  ;;  %v1504_v46 = vpop.xlane.xlu1 %1503 }
 0x712   : > { %v1506_v47 = vsub.f32 %v1498_v37, %v1504_v46  ;;  %v1511_v48 = vsel %vm951_vm1, %v3815_v45, 0.0 }
 0x713   : > { %1512 = vadd.xlane.f32.xlu0 %v1511_v48 }
 0x714   : > { %v1509_v49 = vmul.f32 1.442695, %v1506_v47 }
 0x715   : > { %v1570_v50 = vpop.permute.xlu1 %1569 }
 0x716   : > { %3816 = vpow2.f32 %v1509_v49  ;;  %3506 = vmatpush3.bf16.msra.mxu1 %v1570_v50 }
 0x717   : > { %3517 = vmatprep.subr.bf16.mxu1 %v4145_v0 }
 0x719   : > { %v1631_v58 = vpop.permute.xlu1 %1630 }
 0x71a   : > { %v1636_v60 = vsel %vm951_vm1, %v1631_v58, 0 }
 0x71d   : > { %v1681_v1 = vpop.permute.xlu1 %1680 }
 0x71e   : > { %v1686_v3 = vsel %vm951_vm1, %v1681_v1, 0 }
 0x721   : > { %v1679_v4 = vpop.permute.xlu1 %1678 }
 0x723   : > { %v3817_v51 = vpop.eup %3816 }
 0x724   : > { %v1514_v52 = vsel %vm951_vm1, %v3817_v51, 0.0 }
 0x725   : > { %1515 = vadd.xlane.f32.xlu0 %v1514_v52 }
 0x73b   : > { %1523 = vrot.lane.b32.xlu0 %v4551_v8, %s4148_s30 }
 0x73f   : > { %1628 = vrot.lane.b32.xlu0 %v4519_v31, %s4149_s26 }
 0x79c   : > { %v1513_v53 = vpop.xlane.xlu0 %1512 }
 0x79d   : > { %3818 = vrcp.f32 %v1513_v53 }
 0x7aa   : > { %v3819_v54 = vpop.eup %3818 }
 0x7ab   : > { %v1519_v56 = vmul.f32 %v3819_v54, %v3815_v45 }
 0x7ad   : > { %v1521_v59 = vpack.c.bf16 %v1519_v56, %v1519_v56 }
 0x7ae   : > { %v1516_v55 = vpop.xlane.xlu0 %1515 }
 0x7af   : > { %3820 = vrcp.f32 %v1516_v55 }
 0x7b2   : > { %v1524_v57 = vpop.permute.xlu0 %1523 }
 0x7b3   : > { %3500 = vmatpush3.bf16.msra.mxu0 %v1524_v57 }
 0x7b4   : > { %3511 = vmatprep.subr.bf16.mxu0 %v4145_v0 }
 0x7b6   : > { %3502 = vmatmul.mubr.msk.bf16.vlgmr.msra.gmra.mxu0 %vm951_vm1, %v1521_v59  ;;  %v1629_v62 = vpop.permute.xlu0 %1628 }
 0x7b7   : > { %3512 = vmatpush3.bf16.xpose.msra.mxu0 %v1636_v60  ;;  %3513 = vmatprep.mubr.msk.bf16.mxu0 %vm4146_vm0, %v4145_v0 }
 0x7b8   : > { %3523 = vmatprep.subr.bf16.mxu0 %v4145_v0 }
 0x7bc   : > { %v3821_v61 = vpop.eup %3820 }
 0x7bd   : > { %v1520_v63 = vmul.f32 %v3821_v61, %v3817_v51 }
 0x7be   : > { %3514 = vmatmul.mubr.msk.bf16.vlgmr.msra.gmra.mxu0 %vm951_vm1, %v1629_v62 }
 0x7bf   : > { %v1522_v2 = vpack.c.bf16 %v1520_v63, %v1520_v63  ;;  %3525 = vmatprep.mubr.msk.bf16.mxu0 %vm4146_vm0, %v4145_v0 }
 0x7c1   : > { %3508 = vmatmul.mubr.msk.bf16.vlgmr.msra.gmra.mxu1 %vm951_vm1, %v1522_v2 }
 0x7c2   : > { %3518 = vmatpush3.bf16.xpose.msra.mxu1 %v1686_v3  ;;  %3519 = vmatprep.mubr.msk.bf16.mxu1 %vm4146_vm0, %v4145_v0 }
 0x7c3   : > { %3529 = vmatprep.subr.bf16.mxu1 %v4145_v0 }
 0x7c9   : > { %3520 = vmatmul.mubr.msk.bf16.vlgmr.msra.gmra.mxu1 %vm951_vm1, %v1679_v4 }
 0x7ca   : > { %3531 = vmatprep.mubr.msk.bf16.mxu1 %vm4146_vm0, %v4145_v0 }
 0x876   : > { %v4655_v5 = vpop.f32.mrf.mxu0 }
 0x878   : > { %v3503_v7 = vpop.f32.mrf.mxu0 }
 0x87a   : > { %v1566_v9 = vpop.f32.mrf.mxu0 }
 0x87c   : > { %v3504_v10 = vpop.f32.mrf.mxu0 }
 0x87e   : > { %v1672_v11 = vpop.f32.mrf.mxu0 }
 0x87f   : > { %v1728_v12 = vmul.f32 0.088388346, %v1672_v11 }
 0x880   : > { %v3515_v13 = vpop.f32.mrf.mxu0 }
 0x881   : > { %v4657_v14 = vpop.f32.mrf.mxu1  ;;  %v1730_v15 = vsel %vm951_vm1, %v1728_v12, -inf }
 0x882   : > { %1731 = vmax.xlane.f32.xlu0 %v1730_v15  ;;  %v1675_v16 = vpop.f32.mrf.mxu0 }
 0x883   : > { %v3509_v17 = vpop.f32.mrf.mxu1 }
 0x884   : > { %v3516_v19 = vpop.f32.mrf.mxu0 }
 0x885   : > { %v1612_v20 = vpop.f32.mrf.mxu1 }
 0x887   : > { %v3510_v21 = vpop.f32.mrf.mxu1 }
 0x889   : > { %v1722_v23 = vpop.f32.mrf.mxu1 }
 0x88a   : > { %v1729_v24 = vmul.f32 0.088388346, %v1722_v23 }
 0x88b   : > { %v3521_v25 = vpop.f32.mrf.mxu1 }
 0x88c   : > { %v1733_v28 = vsel %vm951_vm1, %v1729_v24, -inf }
 0x88d   : > { %1734 = vmax.xlane.f32.xlu1 %v1733_v28  ;;  %v1725_v32 = vpop.f32.mrf.mxu1 }
 0x88f   : > { %v3522_v34 = vpop.f32.mrf.mxu1 }
 0x89e   : > { %1800 = vrot.lane.b32.xlu1 %v4549_v6, %s4149_s26 }
 0x8a2   : > { %1861 = vrot.lane.b32.xlu1 %v4510_v27, %s4150_s10 }
 0x8a6   : > { %1911 = vrot.lane.b32.xlu1 %v4515_v30, %s4150_s10 }
 0x8aa   : > { %1909 = vrot.lane.b32.xlu1 %v4530_v33, %s4150_s10 }
 0x90b   : > { %v1732_v35 = vpop.xlane.xlu0 %1731 }
 0x90c   : > { %v1736_v36 = vsub.f32 %v1728_v12, %v1732_v35 }
 0x90e   : > { %v1738_v37 = vmul.f32 1.442695, %v1736_v36 }
 0x910   : > { %3822 = vpow2.f32 %v1738_v37 }
 0x916   : > { %v1735_v38 = vpop.xlane.xlu1 %1734 }
 0x917   : > { %v1737_v39 = vsub.f32 %v1729_v24, %v1735_v38 }
 0x919   : > { %v1740_v40 = vmul.f32 1.442695, %v1737_v39 }
 0x91a   : > { %v1801_v41 = vpop.permute.xlu1 %1800 }
 0x91b   : > { %3824 = vpow2.f32 %v1740_v40  ;;  %3530 = vmatpush3.bf16.msra.mxu1 %v1801_v41 }
 0x91c   : > { %3541 = vmatprep.subr.bf16.mxu1 %v4145_v0 }
 0x91d   : > { %v3823_v42 = vpop.eup %3822 }
 0x91e   : > { %v1742_v43 = vsel %vm951_vm1, %v3823_v42, 0.0  ;;  %v1862_v51 = vpop.permute.xlu1 %1861 }
 0x91f   : > { %1743 = vadd.xlane.f32.xlu0 %v1742_v43  ;;  %v1867_v53 = vsel %vm951_vm1, %v1862_v51, 0 }
 0x922   : > { %v1912_v57 = vpop.permute.xlu1 %1911 }
 0x923   : > { %v1917_v59 = vsel %vm951_vm1, %v1912_v57, 0 }
 0x926   : > { %v1910_v60 = vpop.permute.xlu1 %1909 }
 0x928   : > { %v3825_v44 = vpop.eup %3824 }
 0x929   : > { %v1745_v45 = vsel %vm951_vm1, %v3825_v44, 0.0 }
 0x92a   : > { %1746 = vadd.xlane.f32.xlu0 %v1745_v45 }
 0x940   : > { %1754 = vrot.lane.b32.xlu0 %v4551_v8, %s4149_s26 }
 0x944   : > { %1859 = vrot.lane.b32.xlu0 %v4519_v31, %s4150_s10 }
 0x9a8   : > { %v1744_v46 = vpop.xlane.xlu0 %1743 }
 0x9a9   : > { %3826 = vrcp.f32 %v1744_v46 }
 0x9b3   : > { %v1747_v47 = vpop.xlane.xlu0 %1746 }
 0x9b4   : > { %3828 = vrcp.f32 %v1747_v47 }
 0x9b6   : > { %v3827_v48 = vpop.eup %3826 }
 0x9b7   : > { %v1755_v49 = vpop.permute.xlu0 %1754  ;;  %v1750_v50 = vmul.f32 %v3827_v48, %v3823_v42 }
 0x9b8   : > { %3524 = vmatpush3.bf16.msra.mxu0 %v1755_v49 }
 0x9b9   : > { %v1752_v52 = vpack.c.bf16 %v1750_v50, %v1750_v50  ;;  %3535 = vmatprep.subr.bf16.mxu0 %v4145_v0 }
 0x9bb   : > { %3526 = vmatmul.mubr.msk.bf16.vlgmr.msra.gmra.mxu0 %vm951_vm1, %v1752_v52  ;;  %v1860_v55 = vpop.permute.xlu0 %1859 }
 0x9bc   : > { %3536 = vmatpush3.bf16.xpose.msra.mxu0 %v1867_v53  ;;  %3537 = vmatprep.mubr.msk.bf16.mxu0 %vm4146_vm0, %v4145_v0 }
 0x9bd   : > { %3547 = vmatprep.subr.bf16.mxu0 %v4145_v0 }
 0x9c1   : > { %v3829_v54 = vpop.eup %3828 }
 0x9c2   : > { %v1751_v56 = vmul.f32 %v3829_v54, %v3825_v44 }
 0x9c3   : > { %3538 = vmatmul.mubr.msk.bf16.vlgmr.msra.gmra.mxu0 %vm951_vm1, %v1860_v55 }
 0x9c4   : > { %v1753_v58 = vpack.c.bf16 %v1751_v56, %v1751_v56  ;;  %3549 = vmatprep.mubr.msk.bf16.mxu0 %vm4146_vm0, %v4145_v0 }
 0x9c6   : > { %3532 = vmatmul.mubr.msk.bf16.vlgmr.msra.gmra.mxu1 %vm951_vm1, %v1753_v58 }
 0x9c7   : > { %3542 = vmatpush3.bf16.xpose.msra.mxu1 %v1917_v59  ;;  %3543 = vmatprep.mubr.msk.bf16.mxu1 %vm4146_vm0, %v4145_v0 }
 0x9c8   : > { %3553 = vmatprep.subr.bf16.mxu1 %v4145_v0 }
 0x9ce   : > { %3544 = vmatmul.mubr.msk.bf16.vlgmr.msra.gmra.mxu1 %vm951_vm1, %v1910_v60 }
 0x9cf   : > { %3555 = vmatprep.mubr.msk.bf16.mxu1 %vm4146_vm0, %v4145_v0 }
 0xa7b   : > { %v4693_v61 = vpop.f32.mrf.mxu0 }
 0xa7d   : > { %v3527_v62 = vpop.f32.mrf.mxu0 }
 0xa7f   : > { %v1797_v63 = vpop.f32.mrf.mxu0 }
 0xa81   : > { %v3528_v1 = vpop.f32.mrf.mxu0 }
 0xa83   : > { %v1903_v2 = vpop.f32.mrf.mxu0 }
 0xa84   : > { %v1959_v3 = vmul.f32 0.088388346, %v1903_v2 }
 0xa85   : > { %v3539_v4 = vpop.f32.mrf.mxu0 }
 0xa86   : > { %v4695_v7 = vpop.f32.mrf.mxu1  ;;  %v1961_v9 = vsel %vm951_vm1, %v1959_v3, -inf }
 0xa87   : > { %1962 = vmax.xlane.f32.xlu0 %v1961_v9  ;;  %v1906_v10 = vpop.f32.mrf.mxu0 }
 0xa88   : > { %v3533_v11 = vpop.f32.mrf.mxu1 }
 0xa89   : > { %v3540_v12 = vpop.f32.mrf.mxu0 }
 0xa8a   : > { %v1843_v13 = vpop.f32.mrf.mxu1 }
 0xa8c   : > { %v3534_v15 = vpop.f32.mrf.mxu1 }
 0xa8e   : > { %v1953_v16 = vpop.f32.mrf.mxu1 }
 0xa8f   : > { %v1960_v17 = vmul.f32 0.088388346, %v1953_v16 }
 0xa90   : > { %v3545_v19 = vpop.f32.mrf.mxu1 }
 0xa91   : > { %v1964_v20 = vsel %vm951_vm1, %v1960_v17, -inf }
 0xa92   : > { %1965 = vmax.xlane.f32.xlu1 %v1964_v20  ;;  %v1956_v21 = vpop.f32.mrf.mxu1 }
 0xa94   : > { %v3546_v23 = vpop.f32.mrf.mxu1 }
 0xaa3   : > { %2031 = vrot.lane.b32.xlu1 %v4549_v6, %s4150_s10 }
 0xaa7   : > { %2092 = vrot.lane.b32.xlu1 %v4510_v27, %s4151_s28 }
 0xaab   : > { %2142 = vrot.lane.b32.xlu1 %v4515_v30, %s4151_s28 }
 0xaaf   : > { %2140 = vrot.lane.b32.xlu1 %v4530_v33, %s4151_s28 }
 0xb10   : > { %v1963_v24 = vpop.xlane.xlu0 %1962 }
 0xb11   : > { %v1967_v25 = vsub.f32 %v1959_v3, %v1963_v24 }
 0xb13   : > { %v1969_v28 = vmul.f32 1.442695, %v1967_v25 }
 0xb15   : > { %3830 = vpow2.f32 %v1969_v28 }
 0xb1b   : > { %v1966_v32 = vpop.xlane.xlu1 %1965 }
 0xb1c   : > { %v1968_v34 = vsub.f32 %v1960_v17, %v1966_v32 }
 0xb1e   : > { %v1971_v35 = vmul.f32 1.442695, %v1968_v34 }
 0xb1f   : > { %v2032_v36 = vpop.permute.xlu1 %2031 }
 0xb20   : > { %3832 = vpow2.f32 %v1971_v35  ;;  %3554 = vmatpush3.bf16.msra.mxu1 %v2032_v36 }
 0xb21   : > { %3565 = vmatprep.subr.bf16.mxu1 %v4145_v0 }
 0xb22   : > { %v3831_v37 = vpop.eup %3830 }
 0xb23   : > { %v1973_v38 = vsel %vm951_vm1, %v3831_v37, 0.0  ;;  %v2093_v46 = vpop.permute.xlu1 %2092 }
 0xb24   : > { %1974 = vadd.xlane.f32.xlu0 %v1973_v38  ;;  %v2098_v48 = vsel %vm951_vm1, %v2093_v46, 0 }
 0xb27   : > { %v2143_v52 = vpop.permute.xlu1 %2142 }
 0xb28   : > { %v2148_v54 = vsel %vm951_vm1, %v2143_v52, 0 }
 0xb2b   : > { %v2141_v55 = vpop.permute.xlu1 %2140 }
 0xb2d   : > { %v3833_v39 = vpop.eup %3832 }
 0xb2e   : > { %v1976_v40 = vsel %vm951_vm1, %v3833_v39, 0.0 }
 0xb2f   : > { %1977 = vadd.xlane.f32.xlu0 %v1976_v40 }
 0xb45   : > { %1985 = vrot.lane.b32.xlu0 %v4551_v8, %s4150_s10 }
 0xb49   : > { %2090 = vrot.lane.b32.xlu0 %v4519_v31, %s4151_s28 }
 0xbad   : > { %v1975_v41 = vpop.xlane.xlu0 %1974 }
 0xbae   : > { %3834 = vrcp.f32 %v1975_v41 }
 0xbb8   : > { %v1978_v42 = vpop.xlane.xlu0 %1977 }
 0xbb9   : > { %3836 = vrcp.f32 %v1978_v42 }
 0xbbb   : > { %v3835_v43 = vpop.eup %3834 }
 0xbbc   : > { %v1986_v44 = vpop.permute.xlu0 %1985  ;;  %v1981_v45 = vmul.f32 %v3835_v43, %v3831_v37 }
 0xbbd   : > { %3548 = vmatpush3.bf16.msra.mxu0 %v1986_v44 }
 0xbbe   : > { %v1983_v47 = vpack.c.bf16 %v1981_v45, %v1981_v45  ;;  %3559 = vmatprep.subr.bf16.mxu0 %v4145_v0 }
 0xbc0   : > { %3550 = vmatmul.mubr.msk.bf16.vlgmr.msra.gmra.mxu0 %vm951_vm1, %v1983_v47  ;;  %v2091_v50 = vpop.permute.xlu0 %2090 }
 0xbc1   : > { %3560 = vmatpush3.bf16.xpose.msra.mxu0 %v2098_v48  ;;  %3561 = vmatprep.mubr.msk.bf16.mxu0 %vm4146_vm0, %v4145_v0 }
 0xbc2   : > { %3571 = vmatprep.subr.bf16.mxu0 %v4145_v0 }
 0xbc6   : > { %v3837_v49 = vpop.eup %3836 }
 0xbc7   : > { %v1982_v51 = vmul.f32 %v3837_v49, %v3833_v39 }
 0xbc8   : > { %3562 = vmatmul.mubr.msk.bf16.vlgmr.msra.gmra.mxu0 %vm951_vm1, %v2091_v50 }
 0xbc9   : > { %v1984_v53 = vpack.c.bf16 %v1982_v51, %v1982_v51  ;;  %3573 = vmatprep.mubr.msk.bf16.mxu0 %vm4146_vm0, %v4145_v0 }
 0xbcb   : > { %3556 = vmatmul.mubr.msk.bf16.vlgmr.msra.gmra.mxu1 %vm951_vm1, %v1984_v53 }
 0xbcc   : > { %3566 = vmatpush3.bf16.xpose.msra.mxu1 %v2148_v54  ;;  %3567 = vmatprep.mubr.msk.bf16.mxu1 %vm4146_vm0, %v4145_v0 }
 0xbcd   : > { %3577 = vmatprep.subr.bf16.mxu1 %v4145_v0 }
 0xbd3   : > { %3568 = vmatmul.mubr.msk.bf16.vlgmr.msra.gmra.mxu1 %vm951_vm1, %v2141_v55 }
 0xbd4   : > { %3579 = vmatprep.mubr.msk.bf16.mxu1 %vm4146_vm0, %v4145_v0 }
 0xc80   : > { %v4731_v56 = vpop.f32.mrf.mxu0 }
 0xc82   : > { %v3551_v57 = vpop.f32.mrf.mxu0 }
 0xc84   : > { %v2028_v58 = vpop.f32.mrf.mxu0 }
 0xc86   : > { %v3552_v59 = vpop.f32.mrf.mxu0 }
 0xc88   : > { %v2134_v60 = vpop.f32.mrf.mxu0 }
 0xc89   : > { %v2190_v62 = vmul.f32 0.088388346, %v2134_v60 }
 0xc8a   : > { %v3563_v63 = vpop.f32.mrf.mxu0 }
 0xc8b   : > { %v4733_v1 = vpop.f32.mrf.mxu1  ;;  %v2192_v2 = vsel %vm951_vm1, %v2190_v62, -inf }
 0xc8c   : > { %2193 = vmax.xlane.f32.xlu0 %v2192_v2  ;;  %v2137_v3 = vpop.f32.mrf.mxu0 }
 0xc8d   : > { %v3557_v4 = vpop.f32.mrf.mxu1 }
 0xc8e   : > { %v3564_v9 = vpop.f32.mrf.mxu0 }
 0xc8f   : > { %v2074_v10 = vpop.f32.mrf.mxu1 }
 0xc91   : > { %v3558_v11 = vpop.f32.mrf.mxu1 }
 0xc93   : > { %v2184_v12 = vpop.f32.mrf.mxu1 }
 0xc94   : > { %v2191_v13 = vmul.f32 0.088388346, %v2184_v12 }
 0xc95   : > { %v3569_v15 = vpop.f32.mrf.mxu1 }
 0xc96   : > { %v2195_v16 = vsel %vm951_vm1, %v2191_v13, -inf }
 0xc97   : > { %2196 = vmax.xlane.f32.xlu1 %v2195_v16  ;;  %v2187_v17 = vpop.f32.mrf.mxu1 }
 0xc99   : > { %v3570_v19 = vpop.f32.mrf.mxu1 }
 0xca8   : > { %2262 = vrot.lane.b32.xlu1 %v4549_v6, %s4151_s28 }
 0xcac   : > { %2323 = vrot.lane.b32.xlu1 %v4510_v27, %s4152_s5 }
 0xcb0   : > { %2373 = vrot.lane.b32.xlu1 %v4515_v30, %s4152_s5 }
 0xcb4   : > { %2371 = vrot.lane.b32.xlu1 %v4530_v33, %s4152_s5 }
 0xd15   : > { %v2194_v20 = vpop.xlane.xlu0 %2193 }
 0xd16   : > { %v2198_v21 = vsub.f32 %v2190_v62, %v2194_v20 }
 0xd18   : > { %v2200_v23 = vmul.f32 1.442695, %v2198_v21 }
 0xd1a   : > { %3838 = vpow2.f32 %v2200_v23 }
 0xd20   : > { %v2197_v24 = vpop.xlane.xlu1 %2196 }
 0xd21   : > { %v2199_v25 = vsub.f32 %v2191_v13, %v2197_v24 }
 0xd23   : > { %v2202_v28 = vmul.f32 1.442695, %v2199_v25 }
 0xd24   : > { %v2263_v32 = vpop.permute.xlu1 %2262 }
 0xd25   : > { %3840 = vpow2.f32 %v2202_v28  ;;  %3578 = vmatpush3.bf16.msra.mxu1 %v2263_v32 }
 0xd26   : > { %3589 = vmatprep.subr.bf16.mxu1 %v4145_v0 }
 0xd27   : > { %v3839_v34 = vpop.eup %3838 }
 0xd28   : > { %v2204_v35 = vsel %vm951_vm1, %v3839_v34, 0.0  ;;  %v2324_v43 = vpop.permute.xlu1 %2323 }
 0xd29   : > { %2205 = vadd.xlane.f32.xlu0 %v2204_v35  ;;  %v2329_v45 = vsel %vm951_vm1, %v2324_v43, 0 }
 0xd2c   : > { %v2374_v49 = vpop.permute.xlu1 %2373 }
 0xd2d   : > { %v2379_v51 = vsel %vm951_vm1, %v2374_v49, 0 }
 0xd30   : > { %v2372_v52 = vpop.permute.xlu1 %2371 }
 0xd32   : > { %v3841_v36 = vpop.eup %3840 }
 0xd33   : > { %v2207_v37 = vsel %vm951_vm1, %v3841_v36, 0.0 }
 0xd34   : > { %2208 = vadd.xlane.f32.xlu0 %v2207_v37 }
 0xd4a   : > { %2216 = vrot.lane.b32.xlu0 %v4551_v8, %s4151_s28 }
 0xd4e   : > { %2321 = vrot.lane.b32.xlu0 %v4519_v31, %s4152_s5 }
 0xdb2   : > { %v2206_v38 = vpop.xlane.xlu0 %2205 }
 0xdb3   : > { %3842 = vrcp.f32 %v2206_v38 }
 0xdbd   : > { %v2209_v39 = vpop.xlane.xlu0 %2208 }
 0xdbe   : > { %3844 = vrcp.f32 %v2209_v39 }
 0xdc0   : > { %v3843_v40 = vpop.eup %3842 }
 0xdc1   : > { %v2217_v41 = vpop.permute.xlu0 %2216  ;;  %v2212_v42 = vmul.f32 %v3843_v40, %v3839_v34 }
 0xdc2   : > { %3572 = vmatpush3.bf16.msra.mxu0 %v2217_v41 }
 0xdc3   : > { %v2214_v44 = vpack.c.bf16 %v2212_v42, %v2212_v42  ;;  %3583 = vmatprep.subr.bf16.mxu0 %v4145_v0 }
 0xdc5   : > { %3574 = vmatmul.mubr.msk.bf16.vlgmr.msra.gmra.mxu0 %vm951_vm1, %v2214_v44  ;;  %v2322_v47 = vpop.permute.xlu0 %2321 }
 0xdc6   : > { %3584 = vmatpush3.bf16.xpose.msra.mxu0 %v2329_v45  ;;  %3585 = vmatprep.mubr.msk.bf16.mxu0 %vm4146_vm0, %v4145_v0 }
 0xdc7   : > { %3595 = vmatprep.subr.bf16.mxu0 %v4145_v0 }
 0xdcb   : > { %v3845_v46 = vpop.eup %3844 }
 0xdcc   : > { %v2213_v48 = vmul.f32 %v3845_v46, %v3841_v36 }
 0xdcd   : > { %3586 = vmatmul.mubr.msk.bf16.vlgmr.msra.gmra.mxu0 %vm951_vm1, %v2322_v47 }
 0xdce   : > { %v2215_v50 = vpack.c.bf16 %v2213_v48, %v2213_v48  ;;  %3597 = vmatprep.mubr.msk.bf16.mxu0 %vm4146_vm0, %v4145_v0 }
 0xdd0   : > { %3580 = vmatmul.mubr.msk.bf16.vlgmr.msra.gmra.mxu1 %vm951_vm1, %v2215_v50 }
 0xdd1   : > { %3590 = vmatpush3.bf16.xpose.msra.mxu1 %v2379_v51  ;;  %3591 = vmatprep.mubr.msk.bf16.mxu1 %vm4146_vm0, %v4145_v0 }
 0xdd2   : > { %3601 = vmatprep.subr.bf16.mxu1 %v4145_v0 }
 0xdd8   : > { %3592 = vmatmul.mubr.msk.bf16.vlgmr.msra.gmra.mxu1 %vm951_vm1, %v2372_v52 }
 0xdd9   : > { %3603 = vmatprep.mubr.msk.bf16.mxu1 %vm4146_vm0, %v4145_v0 }
 0xe85   : > { %v4769_v53 = vpop.f32.mrf.mxu0 }
 0xe87   : > { %v3575_v54 = vpop.f32.mrf.mxu0 }
 0xe89   : > { %v2259_v55 = vpop.f32.mrf.mxu0 }
 0xe8b   : > { %v3576_v57 = vpop.f32.mrf.mxu0 }
 0xe8d   : > { %v2365_v58 = vpop.f32.mrf.mxu0 }
 0xe8e   : > { %v2421_v59 = vmul.f32 0.088388346, %v2365_v58 }
 0xe8f   : > { %v3587_v60 = vpop.f32.mrf.mxu0 }
 0xe90   : > { %v4771_v62 = vpop.f32.mrf.mxu1  ;;  %v2423_v63 = vsel %vm951_vm1, %v2421_v59, -inf }
 0xe91   : > { %2424 = vmax.xlane.f32.xlu0 %v2423_v63  ;;  %v2368_v2 = vpop.f32.mrf.mxu0 }
 0xe92   : > { %v3581_v3 = vpop.f32.mrf.mxu1 }
 0xe93   : > { %v3588_v4 = vpop.f32.mrf.mxu0 }
 0xe94   : > { %v2305_v9 = vpop.f32.mrf.mxu1 }
 0xe96   : > { %v3582_v10 = vpop.f32.mrf.mxu1 }
 0xe98   : > { %v2415_v11 = vpop.f32.mrf.mxu1 }
 0xe99   : > { %v2422_v12 = vmul.f32 0.088388346, %v2415_v11 }
 0xe9a   : > { %v3593_v13 = vpop.f32.mrf.mxu1 }
 0xe9b   : > { %v2426_v15 = vsel %vm951_vm1, %v2422_v12, -inf }
 0xe9c   : > { %2427 = vmax.xlane.f32.xlu1 %v2426_v15  ;;  %v2418_v16 = vpop.f32.mrf.mxu1 }
 0xe9e   : > { %v3594_v17 = vpop.f32.mrf.mxu1 }
 0xead   : > { %2493 = vrot.lane.b32.xlu1 %v4549_v6, %s4152_s5 }
 0xeb1   : > { %2554 = vrot.lane.b32.xlu1 %v4510_v27, %s4153_s20 }
 0xeb5   : > { %2604 = vrot.lane.b32.xlu1 %v4515_v30, %s4153_s20 }
 0xeb9   : > { %2602 = vrot.lane.b32.xlu1 %v4530_v33, %s4153_s20 }
 0xf1a   : > { %v2425_v19 = vpop.xlane.xlu0 %2424 }
 0xf1b   : > { %v2429_v20 = vsub.f32 %v2421_v59, %v2425_v19 }
 0xf1d   : > { %v2431_v21 = vmul.f32 1.442695, %v2429_v20 }
 0xf1f   : > { %3846 = vpow2.f32 %v2431_v21 }
 0xf25   : > { %v2428_v23 = vpop.xlane.xlu1 %2427 }
 0xf26   : > { %v2430_v24 = vsub.f32 %v2422_v12, %v2428_v23 }
 0xf28   : > { %v2433_v25 = vmul.f32 1.442695, %v2430_v24 }
 0xf29   : > { %v2494_v28 = vpop.permute.xlu1 %2493 }
 0xf2a   : > { %3848 = vpow2.f32 %v2433_v25  ;;  %3602 = vmatpush3.bf16.msra.mxu1 %v2494_v28 }
 0xf2b   : > { %3613 = vmatprep.subr.bf16.mxu1 %v4145_v0 }
 0xf2c   : > { %v3847_v32 = vpop.eup %3846 }
 0xf2d   : > { %v2435_v27 = vsel %vm951_vm1, %v3847_v32, 0.0  ;;  %v2555_v39 = vpop.permute.xlu1 %2554 }
 0xf2e   : > { %2436 = vadd.xlane.f32.xlu0 %v2435_v27  ;;  %v2560_v41 = vsel %vm951_vm1, %v2555_v39, 0 }
 0xf31   : > { %v2605_v44 = vpop.permute.xlu1 %2604 }
 0xf32   : > { %v2610_v46 = vsel %vm951_vm1, %v2605_v44, 0 }
 0xf35   : > { %v2603_v47 = vpop.permute.xlu1 %2602 }
 0xf37   : > { %v3849_v30 = vpop.eup %3848 }
 0xf38   : > { %v2438_v34 = vsel %vm951_vm1, %v3849_v30, 0.0 }
 0xf39   : > { %2439 = vadd.xlane.f32.xlu0 %v2438_v34 }
 0xf4f   : > { %2447 = vrot.lane.b32.xlu0 %v4551_v8, %s4152_s5 }
 0xf53   : > { %2552 = vrot.lane.b32.xlu0 %v4519_v31, %s4153_s20 }
 0xfb7   : > { %v2437_v33 = vpop.xlane.xlu0 %2436 }
 0xfb8   : > { %3850 = vrcp.f32 %v2437_v33 }
 0xfc2   : > { %v2440_v35 = vpop.xlane.xlu0 %2439 }
 0xfc3   : > { %3852 = vrcp.f32 %v2440_v35 }
 0xfc5   : > { %v3851_v36 = vpop.eup %3850 }
 0xfc6   : > { %v2448_v37 = vpop.permute.xlu0 %2447  ;;  %v2443_v38 = vmul.f32 %v3851_v36, %v3847_v32 }
 0xfc7   : > { %3596 = vmatpush3.bf16.msra.mxu0 %v2448_v37 }
 0xfc8   : > { %v2445_v40 = vpack.c.bf16 %v2443_v38, %v2443_v38  ;;  %3607 = vmatprep.subr.bf16.mxu0 %v4145_v0 }
 0xfca   : > { %3598 = vmatmul.mubr.msk.bf16.vlgmr.msra.gmra.mxu0 %vm951_vm1, %v2445_v40  ;;  %v2553_v42 = vpop.permute.xlu0 %2552 }
 0xfcb   : > { %3608 = vmatpush3.bf16.xpose.msra.mxu0 %v2560_v41  ;;  %3609 = vmatprep.mubr.msk.bf16.mxu0 %vm4146_vm0, %v4145_v0 }
 0xfcc   : > { %3619 = vmatprep.subr.bf16.mxu0 %v4145_v0 }
 0xfd0   : > { %v3853_v31 = vpop.eup %3852 }
 0xfd1   : > { %v2444_v43 = vmul.f32 %v3853_v31, %v3849_v30 }
 0xfd2   : > { %3610 = vmatmul.mubr.msk.bf16.vlgmr.msra.gmra.mxu0 %vm951_vm1, %v2553_v42 }
 0xfd3   : > { %v2446_v45 = vpack.c.bf16 %v2444_v43, %v2444_v43  ;;  %3621 = vmatprep.mubr.msk.bf16.mxu0 %vm4146_vm0, %v4145_v0 }
 0xfd5   : > { %3604 = vmatmul.mubr.msk.bf16.vlgmr.msra.gmra.mxu1 %vm951_vm1, %v2446_v45 }
 0xfd6   : > { %3614 = vmatpush3.bf16.xpose.msra.mxu1 %v2610_v46  ;;  %3615 = vmatprep.mubr.msk.bf16.mxu1 %vm4146_vm0, %v4145_v0 }
 0xfd7   : > { %3625 = vmatprep.subr.bf16.mxu1 %v4145_v0 }
 0xfdd   : > { %3616 = vmatmul.mubr.msk.bf16.vlgmr.msra.gmra.mxu1 %vm951_vm1, %v2603_v47 }
 0xfde   : > { %3627 = vmatprep.mubr.msk.bf16.mxu1 %vm4146_vm0, %v4145_v0 }
0x108a   : > { %v4807_v48 = vpop.f32.mrf.mxu0 }
0x108c   : > { %v3599_v49 = vpop.f32.mrf.mxu0 }
0x108e   : > { %v2490_v50 = vpop.f32.mrf.mxu0 }
0x1090   : > { %v3600_v51 = vpop.f32.mrf.mxu0 }
0x1092   : > { %v2596_v52 = vpop.f32.mrf.mxu0 }
0x1093   : > { %v2652_v54 = vmul.f32 0.088388346, %v2596_v52 }
0x1094   : > { %v3611_v55 = vpop.f32.mrf.mxu0 }
0x1095   : > { %v2533_v57 = vpop.f32.mrf.mxu1  ;;  %v2654_v58 = vsel %vm951_vm1, %v2652_v54, -inf }
0x1096   : > { %2655 = vmax.xlane.f32.xlu0 %v2654_v58  ;;  %v2599_v59 = vpop.f32.mrf.mxu0 }
0x1097   : > { %v3605_v60 = vpop.f32.mrf.mxu1 }
0x1098   : > { %v3612_v63 = vpop.f32.mrf.mxu0 }
0x1099   : > { %v2536_v2 = vpop.f32.mrf.mxu1 }
0x109b   : > { %v3606_v3 = vpop.f32.mrf.mxu1 }
0x109d   : > { %v2646_v4 = vpop.f32.mrf.mxu1 }
0x109e   : > { %v2653_v9 = vmul.f32 0.088388346, %v2646_v4 }
0x109f   : > { %v3617_v10 = vpop.f32.mrf.mxu1 }
0x10a0   : > { %v2657_v11 = vsel %vm951_vm1, %v2653_v9, -inf }
0x10a1   : > { %2658 = vmax.xlane.f32.xlu1 %v2657_v11  ;;  %v2649_v12 = vpop.f32.mrf.mxu1 }
0x10a3   : > { %v3618_v13 = vpop.f32.mrf.mxu1 }
0x10a4   : > { %v3790_v13 = vld [vmem:[#allocation14 + $0x38] sm:$0xff]  }
0x10b2   : > { %2724 = vrot.lane.b32.xlu1 %v4549_v6, %s4153_s20 }
0x10b6   : > { %1386 = vrot.lane.b32.xlu1 %v4617_v18, %s4153_s20 }
0x10ba   : > { %1388 = vrot.lane.b32.xlu1 %v4620_v29, %s4153_s20 }
0x10be   : > { %1619 = vrot.lane.b32.xlu1 %v4657_v14, %s4152_s5 }
0x10c2   : > { %1850 = vrot.lane.b32.xlu1 %v4695_v7, %s4151_s28 }
0x10c6   : > { %2081 = vrot.lane.b32.xlu1 %v4733_v1, %s4150_s10 }
0x10ca   : > { %2312 = vrot.lane.b32.xlu1 %v4771_v62, %s4149_s26 }
0x10ce   : > { %2543 = vrot.lane.b32.xlu1 %v2533_v57, %s4148_s30 }
0x111f   : > { %v2656_v6 = vpop.xlane.xlu0 %2655 }
0x1120   : > { %v2660_v15 = vsub.f32 %v2652_v54, %v2656_v6  ;;  %v3791_v6 = vld [vmem:[#allocation14 + $0x30] sm:$0xff]  }
0x1122   : > { %v2662_v18 = vmul.f32 1.442695, %v2660_v15  ;;  %v3793_v15 = vld [vmem:[#allocation14 + $0x20] sm:$0xff]  }
0x1124   : > { %3854 = vpow2.f32 %v2662_v18  ;;  %v3795_v18 = vld [vmem:[#allocation14 + $0x10] sm:$0xff]  }
0x112a   : > { %v2659_v16 = vpop.xlane.xlu1 %2658 }
0x112b   : > { %v2661_v29 = vsub.f32 %v2653_v9, %v2659_v16  ;;  %v3796_v16 = vld [vmem:[#allocation14 + $0x8] sm:$0xff]  }
0x112d   : > { %v2664_v17 = vmul.f32 1.442695, %v2661_v29  ;;  %v3797_v29 = vld [vmem:[#allocation14] sm:$0xff]  }
0x112e   : > { %v2725_v19 = vpop.permute.xlu1 %2724 }
0x112f   : > { %3856 = vpow2.f32 %v2664_v17  ;;  %3626 = vmatpush3.bf16.msra.mxu1 %v2725_v19 }
0x1131   : > { %v3855_v14 = vpop.eup %3854 }
0x1132   : > { %v1387_v7 = vpop.permute.xlu1 %1386  ;;  %v2666_v1 = vsel %vm951_vm1, %v3855_v14, 0.0 }
0x1133   : > { %v1392_v20 = vadd.f32 %v1387_v7, %v4506_v22  ;;  %2667 = vadd.xlane.f32.xlu0 %v2666_v1 }
0x1135   : > { %1395 = vst.msk [vmem:[#allocation2] sm:$0xff] %vm1394_vm2, %v1392_v20 }
0x1136   : > { %v1389_v62 = vpop.permute.xlu1 %1388 }
0x1137   : > { %v1393_v21 = vadd.f32 %v1389_v62, %v4508_v26 }
0x1139   : > { %1396 = vst.msk [vmem:[#allocation2 + $0x8] sm:$0xff] %vm1394_vm2, %v1393_v21 }
0x113a   : > { %v1620_v23 = vpop.permute.xlu1 %1619 }
0x113b   : > { %v1624_v24 = vadd.f32 %v1620_v23, %v4508_v26 }
0x113c   : > { %v3857_v25 = vpop.eup %3856 }
0x113d   : > { %1627 = vst.msk [vmem:[#allocation2 + $0x8] sm:$0xff] %vm1625_vm3, %v1624_v24  ;;  %v2669_v28 = vsel %vm951_vm1, %v3857_v25, 0.0 }
0x113e   : > { %2670 = vadd.xlane.f32.xlu0 %v2669_v28  ;;  %v1851_v32 = vpop.permute.xlu1 %1850 }
0x113f   : > { %v1855_v27 = vadd.f32 %v1851_v32, %v4508_v26 }
0x1141   : > { %1858 = vst.msk [vmem:[#allocation2 + $0x8] sm:$0xff] %vm1856_vm4, %v1855_v27 }
0x1142   : > { %v2082_v30 = vpop.permute.xlu1 %2081 }
0x1143   : > { %v2086_v34 = vadd.f32 %v2082_v30, %v4508_v26 }
0x1145   : > { %2089 = vst.msk [vmem:[#allocation2 + $0x8] sm:$0xff] %vm2087_vm5, %v2086_v34 }
0x1146   : > { %v2313_v33 = vpop.permute.xlu1 %2312 }
0x1147   : > { %v2317_v35 = vadd.f32 %v2313_v33, %v4508_v26 }
0x1149   : > { %2320 = vst.msk [vmem:[#allocation2 + $0x8] sm:$0xff] %vm2318_vm6, %v2317_v35 }
0x114a   : > { %v2544_v36 = vpop.permute.xlu1 %2543 }
0x114b   : > { %v2548_v37 = vadd.f32 %v2544_v36, %v4508_v26  ;;  %v3253_v36 = vld [vmem:[%s4951_s8] ss:$0 sm:$0xff] }
0x114d   : > { %2551 = vst.msk [vmem:[#allocation2 + $0x8] sm:$0xff] %vm2549_vm7, %v2548_v37 }
0x1154   : > { %2678 = vrot.lane.b32.xlu0 %v4551_v8, %s4153_s20 }
0x1158   : > { %1617 = vrot.lane.b32.xlu0 %v4655_v5, %s4152_s5  ;;  %s5015_s5 = sld [smem:[#allocation33_spill]] }
0x115c   : > { %1848 = vrot.lane.b32.xlu0 %v4693_v61, %s4151_s28 }
0x1160   : > { %2079 = vrot.lane.b32.xlu0 %v4731_v56, %s4150_s10 }
0x1164   : > { %2310 = vrot.lane.b32.xlu0 %v4769_v53, %s4149_s26 }
0x1168   : > { %2541 = vrot.lane.b32.xlu0 %v4807_v48, %s4148_s30  ;;  %s568_s30 = scalar_lea.vmem [#allocation15], %s4472_s21 }
0x1169   : > { %s3011_s26 = sshll.u32 %s568_s30, 4  ;;  %s4900_s26 = int_to_ptr.vmem [resolvable:$true] %s3011_s26 }
0x116a   : > { %s4058_s13 = scalar_lea.vmem %s4900_s26, 256 }
0x116b   : > { %p4059_p6 = scmp.ne.s32.totalorder %s4900_s26, %s4058_s13 }
0x116d   : > { %p4060_p11 = pnand %p4059_p6, %p5016_p8 }
0x116f   : > { %p4061_p12 = pneg %p4060_p11 }
0x11bc   : > { %v2668_v38 = vpop.xlane.xlu0 %2667 }
0x11bd   : > { %3858 = vrcp.f32 %v2668_v38 }
0x11c7   : > { %v2671_v39 = vpop.xlane.xlu0 %2670 }
0x11c8   : > { %3860 = vrcp.f32 %v2671_v39 }
0x11ca   : > { %v3859_v8 = vpop.eup %3858 }
0x11cb   : > { %v2679_v40 = vpop.permute.xlu0 %2678  ;;  %v2674_v41 = vmul.f32 %v3859_v8, %v3855_v14 }
0x11cc   : > { %3620 = vmatpush3.bf16.msra.mxu0 %v2679_v40  ;;  %v3254_v40 = vld [vmem:[%s4952_s9] ss:$0 sm:$0xff] }
0x11cd   : > { %v2676_v5 = vpack.c.bf16 %v2674_v41, %v2674_v41  ;;  %3631 = vmatprep.subr.bf16.mxu0 %v4145_v0 }
0x11cf   : > { %3622 = vmatmul.mubr.msk.bf16.vlgmr.msra.gmra.mxu0 %vm951_vm1, %v2676_v5  ;;  %v1618_v61 = vpop.permute.xlu0 %1617 }
0x11d0   : > { %v1623_v56 = vadd.f32 %v1618_v61, %v4506_v22  ;;  %3647 = vmatprep.mubr.msk.bf16.mxu0 %vm4146_vm0, %v4145_v0  ;;  %3632 = vmatpush3.bf16.msra.mxu0 %v3790_v13 }
0x11d1   : > { %3633 = vmatprep.subr.bf16.mxu0 %v4145_v0 }
0x11d2   : > { %1626 = vst.msk [vmem:[#allocation2] sm:$0xff] %vm1625_vm3, %v1623_v56 }
0x11d3   : > { %v1849_v53 = vpop.permute.xlu0 %1848 }
0x11d4   : > { %v1854_v31 = vadd.f32 %v1849_v53, %v4506_v22  ;;  %3634 = vmatpush3.bf16.msra.mxu0 %v3791_v6  ;;  %v3255_v53 = vld [vmem:[%s4950_s7] ss:$0 sm:$0xff] }
0x11d5   : > { %v3861_v42 = vpop.eup %3860  ;;  %3635 = vmatprep.subr.bf16.mxu0 %v4145_v0 }
0x11d6   : > { %1857 = vst.msk [vmem:[#allocation2] sm:$0xff] %vm1856_vm4, %v1854_v31  ;;  %v2675_v43 = vmul.f32 %v3861_v42, %v3857_v25 }
0x11d7   : > { %v2080_v44 = vpop.permute.xlu0 %2079 }
0x11d8   : > { %v2085_v45 = vadd.f32 %v2080_v44, %v4506_v22  ;;  %v2677_v46 = vpack.c.bf16 %v2675_v43, %v2675_v43 }
0x11da   : > { %2088 = vst.msk [vmem:[#allocation2] sm:$0xff] %vm2087_vm5, %v2085_v45  ;;  %3628 = vmatmul.mubr.msk.bf16.vlgmr.msra.gmra.mxu1 %vm951_vm1, %v2677_v46 }
0x11db   : > { %v2311_v47 = vpop.permute.xlu0 %2310 }
0x11dc   : > { %v2316_v48 = vadd.f32 %v2311_v47, %v4506_v22 }
0x11de   : > { %2319 = vst.msk [vmem:[#allocation2] sm:$0xff] %vm2318_vm6, %v2316_v48 }
0x11df   : > { %v2542_v49 = vpop.permute.xlu0 %2541 }
0x11e0   : > { %v2547_v50 = vadd.f32 %v2542_v49, %v4506_v22 }
0x11e2   : > { %2550 = vst.msk [vmem:[#allocation2] sm:$0xff] %vm2549_vm7, %v2547_v50 }
0x128f   : > { %v2718_v51 = vpop.f32.mrf.mxu0 }
0x1290   : > { %2772 = vrot.lane.b32.xlu0 %v2718_v51, %s4147_s27 }
0x1291   : > { %v3623_v52 = vpop.f32.mrf.mxu0 }
0x1293   : > { %v2721_v54 = vpop.f32.mrf.mxu0 }
0x1295   : > { %v3624_v55 = vpop.f32.mrf.mxu0 }
0x129a   : > { %v2764_v57 = vpop.f32.mrf.mxu1 }
0x129b   : > { %2774 = vrot.lane.b32.xlu1 %v2764_v57, %s4147_s27  ;;  %s3276_s27 = sshll.u32 %s4243_s25, 8  ;;  %s4154_s25 = smov [#allocation15]  }
0x129c   : > { %v3629_v58 = vpop.f32.mrf.mxu1  ;;  %s4898_s20 = scalar_lea.hbm %s5015_s5, %s3276_s27  ;;  %s4062_s21 = sshll.u32 %s4154_s25, 4  ;;  %s4063_s21 = int_to_ptr.vmem [resolvable:$false] %s4062_s21 }
0x129d   : > { %s4064_s4 = scalar_lea.vmem %s4063_s21, 512  ;;  %p4065_p10 = scmp.lt.s32.totalorder %s4900_s26, %s4063_s21 }
0x129e   : > { %v2767_v59 = vpop.f32.mrf.mxu1  ;;  %p4066_p5 = scmp.lt.s32.totalorder %s4064_s4, %s4058_s13 }
0x12a0   : > { %v3630_v60 = vpop.f32.mrf.mxu1  ;;  %p4067_p3 = por %p4066_p5, %p4065_p10 }
0x12a2   : > { %p4068_p4 = pnand %p4067_p3, %p4061_p12 }
0x1302   : > { %v2773_v63 = vpop.permute.xlu0 %2772 }
0x1303   : > { %v2778_v2 = vadd.f32 %v2773_v63, %v4506_v22  ;;  %v3792_v22 = vld [vmem:[#allocation14 + $0x28] sm:$0xff]  }
0x1304   : > { %3636 = vmatpush3.bf16.msra.mxu0 %v3792_v22 }
0x1305   : > { %2781 = vst.msk [vmem:[#allocation2] sm:$0xff] %vm2780_vm8, %v2778_v2  ;;  %3637 = vmatprep.subr.bf16.mxu0 %v4145_v0 }
0x1308   : > { %3638 = vmatpush3.bf16.msra.mxu0 %v3793_v15 }
0x1309   : > { %3639 = vmatprep.subr.bf16.mxu0 %v4145_v0 }
0x130c   : > { %v2783_v3 = vld [vmem:[#allocation2] sm:$0xff] }
0x130d   : > { %2785 = vadd.xlane.f32.xlu0 %v2783_v3  ;;  %v2775_v4 = vpop.permute.xlu1 %2774  ;;  %v2792_v10 = vmul.f32 %v2783_v3, %v2783_v3 }
0x130e   : > { %v2779_v9 = vadd.f32 %v2775_v4, %v4508_v26  ;;  %v3794_v26 = vld [vmem:[#allocation14 + $0x18] sm:$0xff]  }
0x130f   : > { %3640 = vmatpush3.bf16.msra.mxu0 %v3794_v26  ;;  %v3264_v26 = vld [vmem:[%s5012_s14] ss:$0 sm:$0xff] }
0x1310   : > { %2782 = vst.msk [vmem:[#allocation2 + $0x8] sm:$0xff] %vm2780_vm8, %v2779_v9  ;;  %3641 = vmatprep.subr.bf16.mxu0 %v4145_v0 }
0x1311   : > { %2794 = vadd.xlane.f32.xlu0 %v2792_v10 }
0x1313   : > { %3642 = vmatpush3.bf16.msra.mxu0 %v3795_v18 }
0x1314   : > { %3643 = vmatprep.subr.bf16.mxu0 %v4145_v0 }
0x1317   : > { %v2784_v11 = vld [vmem:[#allocation2 + $0x8] sm:$0xff]  ;;  %3644 = vmatpush3.bf16.msra.mxu0 %v3796_v16  ;;  %v3265_v16 = vld [vmem:[%s5013_s19] ss:$0 sm:$0xff] }
0x1318   : > { %2787 = vadd.xlane.f32.xlu1 %v2784_v11  ;;  %v2793_v12 = vmul.f32 %v2784_v11, %v2784_v11  ;;  %3645 = vmatprep.subr.bf16.mxu0 %v4145_v0 }
0x131a   : > { %2796 = vadd.xlane.f32.xlu0 %v2793_v12 }
0x131b   : > { %3646 = vmatpush3.bf16.msra.mxu0 %v3797_v29 }
0x1396   : > { %v2786_v17 = vpop.xlane.xlu0 %2785 }
0x1397   : > { %v2790_v19 = vmul.f32 0.0078125, %v2786_v17 }
0x1399   : > { %v2800_v7 = vmul.f32 %v2790_v19, %v2790_v19  ;;  %v2806_v33 = vsub.f32 %v2783_v3, %v2790_v19 }
0x139a   : > { %v2795_v14 = vpop.xlane.xlu0 %2794 }
0x139b   : > { %v2798_v1 = vmul.f32 0.0078125, %v2795_v14 }
0x139d   : > { %v2802_v20 = vsub.f32 %v2798_v1, %v2800_v7 }
0x139f   : > { %v2804_v62 = vmax.f32 %v2802_v20, 0.0 }
0x13a1   : > { %v2788_v21 = vpop.xlane.xlu1 %2787  ;;  %v2808_v23 = vadd.f32 1e-05, %v2804_v62 }
0x13a2   : > { %v2791_v24 = vmul.f32 0.0078125, %v2788_v21 }
0x13a3   : > { %v2797_v25 = vpop.xlane.xlu0 %2796  ;;  %3862 = vrsqrt.f32 %v2808_v23 }
0x13a4   : > { %v2801_v28 = vmul.f32 %v2791_v24, %v2791_v24  ;;  %v2799_v32 = vmul.f32 0.0078125, %v2797_v25  ;;  %v2807_v37 = vsub.f32 %v2784_v11, %v2791_v24 }
0x13a6   : > { %v2803_v27 = vsub.f32 %v2799_v32, %v2801_v28 }
0x13a8   : > { %v2805_v30 = vmax.f32 %v2803_v27, 0.0 }
0x13aa   : > { %v2809_v34 = vadd.f32 1e-05, %v2805_v30 }
0x13ac   : > { %3864 = vrsqrt.f32 %v2809_v34 }
0x13b0   : > { %v3863_v0 = vpop.eup %3862 }
0x13b1   : > { %v2812_v35 = vmul.f32 %v3863_v0, %v2806_v33 }
0x13b3   : > { %v2821_v8 = vmul.f32 %v3253_v36, %v2812_v35 }
0x13b5   : > { %v2830_v5 = vadd.f32 %v3254_v40, %v2821_v8 }
0x13b9   : > { %v3865_v38 = vpop.eup %3864 }
0x13ba   : > { %v2813_v39 = vmul.f32 %v3865_v38, %v2807_v37 }
0x13bc   : > { %v2822_v41 = vmul.f32 %v3253_v36, %v2813_v39 }
0x13be   : > { %v2831_v61 = vadd.f32 %v3254_v40, %v2822_v41 }
0x13c0   : > { %v2832_v56 = vpack.c.bf16 %v2831_v61, %v2830_v5 }
0x13c2   : > { %3648 = vmatmul.mubr.bf16.vlgmr.msra.gmra.mxu0 %v2832_v56 }
0x1482   : > { %v2938_v31 = vpop.f32.mrf.mxu0 }
0x1483   : > { %v2939_v42 = vadd.f32 %v3255_v53, %v2938_v31 }
0x1484   : > { %v3649_v43 = vpop.f32.mrf.mxu0 }
0x1485   : > { %v2945_v44 = vmax.f32 %v2939_v42, 0.0 }
0x1486   : > { %v2941_v45 = vpop.f32.mrf.mxu0 }
0x1487   : > { %v2947_v46 = vadd.f32 %v2945_v44, %v2830_v5  ;;  %v2942_v47 = vadd.f32 %v3255_v53, %v2941_v45 }
0x1488   : > { %v3650_v48 = vpop.f32.mrf.mxu0 }
0x1489   : > { %v2946_v49 = vmax.f32 %v2942_v47, 0.0  ;;  %2949 = vadd.xlane.f32.xlu0 %v2947_v46  ;;  %v2955_v51 = vmul.f32 %v2947_v46, %v2947_v46 }
0x148b   : > { %v2948_v50 = vadd.f32 %v2946_v49, %v2831_v61 }
0x148d   : > { %2957 = vadd.xlane.f32.xlu0 %v2955_v51  ;;  %2951 = vadd.xlane.f32.xlu1 %v2948_v50  ;;  %v2956_v52 = vmul.f32 %v2948_v50, %v2948_v50 }
0x1491   : > { %2959 = vadd.xlane.f32.xlu1 %v2956_v52 }
0x1512   : > { %v2950_v54 = vpop.xlane.xlu0 %2949 }
0x1513   : > { %v2953_v55 = vmul.f32 0.0078125, %v2950_v54 }
0x1515   : > { %v2963_v59 = vmul.f32 %v2953_v55, %v2953_v55  ;;  %v2969_v22 = vsub.f32 %v2947_v46, %v2953_v55 }
0x1516   : > { %v2958_v57 = vpop.xlane.xlu0 %2957  ;;  %v2952_v58 = vpop.xlane.xlu1 %2951 }
0x1517   : > { %v2961_v60 = vmul.f32 0.0078125, %v2958_v57  ;;  %v2954_v63 = vmul.f32 0.0078125, %v2952_v58 }
0x1519   : > { %v2965_v2 = vsub.f32 %v2961_v60, %v2963_v59  ;;  %v2964_v9 = vmul.f32 %v2954_v63, %v2954_v63  ;;  %v2970_v17 = vsub.f32 %v2948_v50, %v2954_v63 }
0x151a   : > { %v2960_v3 = vpop.xlane.xlu1 %2959 }
0x151b   : > { %v2967_v4 = vmax.f32 %v2965_v2, 0.0  ;;  %v2962_v10 = vmul.f32 0.0078125, %v2960_v3 }
0x151d   : > { %v2971_v11 = vadd.f32 1e-05, %v2967_v4  ;;  %v2966_v12 = vsub.f32 %v2962_v10, %v2964_v9 }
0x151f   : > { %3866 = vrsqrt.f32 %v2971_v11  ;;  %v2968_v13 = vmax.f32 %v2966_v12, 0.0 }
0x1521   : > { %v2972_v6 = vadd.f32 1e-05, %v2968_v13 }
0x1523   : > { %3868 = vrsqrt.f32 %v2972_v6 }
0x152c   : > { %v3867_v15 = vpop.eup %3866 }
0x152d   : > { %v2975_v18 = vmul.f32 %v3867_v15, %v2969_v22 }
0x152f   : > { %v2984_v29 = vmul.f32 %v3264_v26, %v2975_v18 }
0x1530   : > { %v3869_v19 = vpop.eup %3868 }
0x1531   : > { %v2976_v14 = vmul.f32 %v3869_v19, %v2970_v17  ;;  %v2993_v7 = vadd.f32 %v3265_v16, %v2984_v29 }
0x1533   : > { %v2985_v1 = vmul.f32 %v3264_v26, %v2976_v14  ;;  %2995 = vst [vmem:[%s568_s30] sm:$0xff] %v2993_v7 }
0x1535   : > { %v2994_v20 = vadd.f32 %v3265_v16, %v2985_v1 }
0x1537   : > { %2996 = vst [vmem:[%s568_s30 + $0x8] sm:$0xff] %v2994_v20 }
0x1538   : > { %4071 = shalt.err (!%p4068_p4)
}
0x1539   : > { %s4072_s11 = scalar_lea.hbm %s4898_s20, 256  ;;  %s4076_s16 = scalar_lea.hbm %s5015_s5, 512 }
0x153a   : > { %p4073_p13 = scmp.ne.s32.totalorder %s4898_s20, %s4072_s11  ;;  %p4077_p2 = scmp.lt.s32.totalorder %s4898_s20, %s5015_s5 }
0x153b   : > { %p4078_p0 = scmp.lt.s32.totalorder %s4076_s16, %s4072_s11 }
0x153c   : > { %p4074_p7 = pnand %p4073_p13, %p5016_p8 }
0x153d   : > { %p4079_p1 = por %p4078_p0, %p4077_p2 }
0x153e   : > { %p4075_p9 = pneg %p4074_p7 }
0x1540   : > { %p4080_p6 = pnand %p4079_p1, %p4075_p9 }
0x1542   : > { %4083 = shalt.err (!%p4080_p6)
}
0x1543   : > { %s4155_s12 = smov 128   ;;  %s4156_s29 = smov 8  }
0x1544   : > { %3673 = dma.vmem_to_hbm [thread:$0]  (%p5016_p8), %s4900_s26, 256, %s4898_s20, %s2998_s15, %s4155_s12, %s4155_s12, %s4156_s29  }
0x1545 PF: > { %s5017_s19 = sld [smem:[#allocation21_spill]]  ;;  %p5020_p12 = scmp.ge.s32.totalorder %s4134_s24, 2 }
0x1546   : > { %s5018_s27 = sld [smem:[#allocation23_spill]] }
0x154b   : > { %s3026_s30 = sand.u32 1, %s5017_s19  }
0x154c   : > { %p5019_p11 = scmp.ne.s32.totalorder %s5018_s27, 0  ;;  %s3027_s10 = scalar_lea.sflag [#allocation5], %s3026_s30 }
0x154e   : > { %p3699_p10 = pnand %p5020_p12, %p5019_p11 }
0x1550   : > { %p3700_p5 = pneg %p3699_p10 }
0x1552   : > { %4117 = dma.done.wait (%p3700_p5), %s3027_s10, 256  }
0x1553   : > { %4119 = vsyncadd (%p3700_p5), %s3027_s10, 4294967040  ;;  %s5021_s24 = sld [smem:[#allocation24_spill]]  ;;  %s5024_s21 = smov %s4126_s22 }
0x1554   : > { %s5022_s28 = sld [smem:[#allocation22_spill]] }
0x1555   : > { %s5023_s23 = sld [smem:[#allocation26_spill]] }
0x1559   : > { %p30_p3 = scmp.ge.s32.totalorder %s5021_s24, 4  }
0x155a   : > { %s5025_s22 = smov %s5022_s28 }
0x155b   :  { %32 = sbr.rel (!%p30_p3) target bundleno = 17 (0x11), region = 153 }
0x1560   :  { %3032 = vsyncpa [#allocation4], 1 }
0x1561   :  { %3034 = vsyncpa [#allocation4 + $0x1], 1 }
0x1562   :  { %3035 = vsyncpa [#allocation7], 1 }
0x1563   :  { %3037 = vsyncpa [#allocation7 + $0x1], 1 }
0x1564   :  { %3038 = vsyncpa [#allocation10], 1 }
0x1565   :  { %3039 = vsyncpa [#allocation13], 1 }
0x1566   :  { %3040 = vsyncpa [#allocation5], 1 }
0x1567   :  { %3042 = vsyncpa [#allocation5 + $0x1], 1 }

</bundles_post_ra>
